<compile_context>
chip_gen: v7x
topology: tpu7x:2x2x1
jax: 0.10.0
libtpu: 0.0.40
codegen_flags: <defaults>
</compile_context>

<pallas_src>
import math

import jax
import jax.numpy as jnp
from jax.experimental import pallas as pl
from jax.experimental.pallas import tpu as pltpu


# ----------------------------------------------------------------------------
# Init-time weight unrolling (runs once; NOT part of the kernel hot path).
# ----------------------------------------------------------------------------
def conv_same_unrolled(w, H, W, stride=2):
    """Conv2dSamePad + Conv2d(k, stride) as a dense matrix.

    w: (Cout, Cin, kH, kW) PyTorch Conv2d weight.
    Returns Wt: (Cin*H*W, Cout*oH*oW) s.t. out_flat = in_flat @ Wt  (bias excl.)
    with row-major NCHW flattening, plus (oH, oW).
    """
    Cout, Cin, kH, kW = w.shape
    oH, oW = math.ceil(H / stride), math.ceil(W / stride)
    ph = max((oH - 1) * stride + kH - H, 0)
    pw = max((oW - 1) * stride + kW - W, 0)
    pads = [(ph // 2, ph - ph // 2), (pw // 2, pw - pw // 2)]  # TF 'SAME'
    eye = jnp.eye(Cin * H * W, dtype=jnp.float32).reshape(Cin * H * W, Cin, H, W)
    out = jax.lax.conv_general_dilated(
        eye, w.astype(jnp.float32), (stride, stride), pads,
        dimension_numbers=("NCHW", "OIHW", "NCHW"))
    return out.reshape(Cin * H * W, Cout * oH * oW), oH, oW


def deconv_same_unrolled(w, H, W, stride=2):
    """ConvTranspose2d(k, stride) + ConvTranspose2dSamePad crop as a matrix.

    w: (Cin, Cout, kH, kW) PyTorch ConvTranspose2d weight.
    Returns Wt: (Cin*H*W, Cout*oH*oW) with oH = H*stride, oW = W*stride.
    """
    Cin, Cout, kH, kW = w.shape
    wt = jnp.transpose(w[:, :, ::-1, ::-1], (1, 0, 2, 3)).astype(jnp.float32)
    eye = jnp.eye(Cin * H * W, dtype=jnp.float32).reshape(Cin * H * W, Cin, H, W)
    full = jax.lax.conv_general_dilated(
        eye, wt, (1, 1), [(kH - 1, kH - 1), (kW - 1, kW - 1)],
        lhs_dilation=(stride, stride),
        dimension_numbers=("NCHW", "OIHW", "NCHW"))
    ph, pw = kH - stride, kW - stride
    pt, pb = ph // 2, ph - ph // 2
    pleft, pright = pw // 2, pw - pw // 2
    fH, fW = full.shape[2], full.shape[3]
    crop = full[:, :, pt:fH - pb, pleft:fW - pright]     # TF-style crop
    oH, oW = crop.shape[2], crop.shape[3]
    return crop.reshape(Cin * H * W, Cout * oH * oW), oH, oW


# ----------------------------------------------------------------------------
# Fused forward kernel: 2 encoder matmuls + self-expression + 2 decoder
# matmuls, bias+ReLU fused, everything in VMEM, single grid point.
# ----------------------------------------------------------------------------
def _make_fused_kernel(n_enc, n_dec):
    n_in = 3 + 2 * (n_enc + n_dec)

    def kernel(*refs):
        x_ref, m_ref, c_ref = refs[:3]
        layer_refs = refs[3:n_in]
        xrec_ref, z_ref, zrec_ref = refs[n_in:n_in + 3]

        def dense_relu(a, w_ref, b_ref):
            # bf16 inputs on the MXU, f32 accumulate, f32 bias/ReLU epilogue.
            acc = jnp.dot(a.astype(w_ref.dtype), w_ref[...],
                          preferred_element_type=jnp.float32)
            return jnp.maximum(acc + b_ref[...], 0.0)

        # encoder
        a = x_ref[...]
        for li in range(n_enc):
            a = dense_relu(a, layer_refs[2 * li], layer_refs[2 * li + 1])
        z_ref[...] = a

        # self-expression: z_recon = Coefficient @ m  (kept f32)
        zr = jnp.dot(c_ref[...], m_ref[...], preferred_element_type=jnp.float32)
        zrec_ref[...] = zr

        # decoder
        h = zr
        for li in range(n_dec):
            off = 2 * (n_enc + li)
            h = dense_relu(h, layer_refs[off], layer_refs[off + 1])
        xrec_ref[...] = h

    return kernel


def dscnet_forward(params, x, m):
    n = x.shape[0]
    enc, dec, C = params["enc"], params["dec"], params["C"]
    n_enc, n_dec = len(enc), len(dec)
    d_lat = enc[-1][1].shape[1]
    d_out = dec[-1][1].shape[1]

    x_flat = x.reshape(n, -1).astype(jnp.float32)
    inputs = [x_flat, m.astype(jnp.float32), C.astype(jnp.float32)]
    for (w2, b) in enc:
        inputs += [w2, b]
    for (w2, b) in dec:
        inputs += [w2, b]

    in_specs = [pl.BlockSpec(a.shape, lambda i: (0, 0)) for a in inputs]
    out_shape = (
        jax.ShapeDtypeStruct((n, d_out), jnp.float32),   # x_recon (flat)
        jax.ShapeDtypeStruct((n, d_lat), jnp.float32),   # z
        jax.ShapeDtypeStruct((n, d_lat), jnp.float32),   # z_recon
    )
    out_specs = [
        pl.BlockSpec((n, d_out), lambda i: (0, 0)),
        pl.BlockSpec((n, d_lat), lambda i: (0, 0)),
        pl.BlockSpec((n, d_lat), lambda i: (0, 0)),
    ]

    xrec_flat, z, z_recon = pl.pallas_call(
        _make_fused_kernel(n_enc, n_dec),
        out_shape=out_shape,
        grid=(1,),
        in_specs=in_specs,
        out_specs=out_specs,
        compiler_params=pltpu.CompilerParams(
            dimension_semantics=("arbitrary",)),
    )(*inputs)

    x_recon = xrec_flat.reshape(x.shape)
    return x_recon, z, z_recon


# ----------------------------------------------------------------------------
# Parameter init: raw PyTorch-layout weights + one-time unrolled/bf16 packing.
# ----------------------------------------------------------------------------
def init_dscnet_params(key, channels, kernels, num_sample, spatial):
    H, W = spatial
    n_enc = len(channels) - 1
    keys = jax.random.split(key, 4 * n_enc + 1)
    ki = 0

    enc, raw_enc = [], []
    h, w_sp = H, W
    for i in range(1, len(channels)):
        k = kernels[i - 1]
        wconv = 0.1 * jax.random.normal(
            keys[ki], (channels[i], channels[i - 1], k, k), jnp.float32); ki += 1
        b = 0.01 * jax.random.normal(keys[ki], (channels[i],), jnp.float32); ki += 1
        Wt, oh, ow = conv_same_unrolled(wconv, h, w_sp, stride=2)
        b_row = jnp.repeat(b, oh * ow).reshape(1, -1).astype(jnp.float32)
        enc.append((Wt.astype(jnp.bfloat16), b_row))
        raw_enc.append((wconv, b))
        h, w_sp = oh, ow

    dec, raw_dec = [], []
    rch = list(reversed(channels))
    rk = list(reversed(kernels))
    for i in range(len(rch) - 1):
        k = rk[i]
        wdec = 0.1 * jax.random.normal(
            keys[ki], (rch[i], rch[i + 1], k, k), jnp.float32); ki += 1
        b = 0.01 * jax.random.normal(keys[ki], (rch[i + 1],), jnp.float32); ki += 1
        Wt, oh, ow = deconv_same_unrolled(wdec, h, w_sp, stride=2)
        b_row = jnp.repeat(b, oh * ow).reshape(1, -1).astype(jnp.float32)
        dec.append((Wt.astype(jnp.bfloat16), b_row))
        raw_dec.append((wdec, b))
        h, w_sp = oh, ow

    C = 1e-2 * jax.random.normal(keys[ki], (num_sample, num_sample), jnp.float32)
    params = {"enc": enc, "dec": dec, "C": C}
    raw = {"enc": raw_enc, "dec": raw_dec}
    return params, raw


# ----------------------------------------------------------------------------
# Pure-JAX reference of the PyTorch module (for numerical verification only).
# ----------------------------------------------------------------------------
def _reference_forward(raw, C, x, m, stride=2):
    h = x
    for (w, b) in raw["enc"]:
        _, _, H, W = h.shape
        k = w.shape[2]
        oH, oW = math.ceil(H / stride), math.ceil(W / stride)
        ph = max((oH - 1) * stride + k - H, 0)
        pw = max((oW - 1) * stride + k - W, 0)
        h = jax.lax.conv_general_dilated(
            h, w, (stride, stride),
            [(ph // 2, ph - ph // 2), (pw // 2, pw - pw // 2)],
            dimension_numbers=("NCHW", "OIHW", "NCHW"))
        h = jax.nn.relu(h + b.reshape(1, -1, 1, 1))
    z = h.reshape(x.shape[0], -1)
    z_recon = C @ m
    g = z_recon.reshape(h.shape)
    for (w, b) in raw["dec"]:
        k = w.shape[2]
        wt = jnp.transpose(w[:, :, ::-1, ::-1], (1, 0, 2, 3))
        full = jax.lax.conv_general_dilated(
            g, wt, (1, 1), [(k - 1, k - 1), (k - 1, k - 1)],
            lhs_dilation=(stride, stride),
            dimension_numbers=("NCHW", "OIHW", "NCHW"))
        ph = pw = k - stride
        pt, pb = ph // 2, ph - ph // 2
        pleft, pright = pw // 2, pw - pw // 2
        fH, fW = full.shape[2], full.shape[3]
        g = jax.nn.relu(full[:, :, pt:fH - pb, pleft:fW - pright]
                        + b.reshape(1, -1, 1, 1))
    return g, z, z_recon


if __name__ == "__main__":
    # Small config: channels=[1, 8, 16], kernels=[3, 3], n=8 samples of 1x16x16
    channels = [1, 8, 16]
    kernels = [3, 3]
    num_sample = 8
    H = W = 16

    key = jax.random.PRNGKey(0)
    kx, km, kp = jax.random.split(key, 3)

    params, raw = init_dscnet_params(kp, channels, kernels, num_sample, (H, W))
    d_latent = params["enc"][-1][1].shape[1]       # 16 * 4 * 4 = 256

    x = jax.random.normal(kx, (num_sample, channels[0], H, W), jnp.float32)
    m = jax.random.normal(km, (num_sample, d_latent), jnp.float32)

    forward = jax.jit(dscnet_forward)
    x_recon, z, z_recon = forward(params, x, m)
    jax.block_until_ready((x_recon, z, z_recon))

    assert x_recon.shape == x.shape, x_recon.shape
    assert z.shape == (num_sample, d_latent), z.shape
    assert z_recon.shape == (num_sample, d_latent), z_recon.shape
    assert bool(jnp.isfinite(x_recon).all())
    assert bool(jnp.isfinite(z).all())
    assert bool(jnp.isfinite(z_recon).all())

    # Numerical check vs. a pure-JAX (lax.conv, f32) reference of the PyTorch
    # module; kernel uses bf16 weights so the tolerance is loose.
    xr_ref, z_ref, zr_ref = _reference_forward(raw, params["C"], x, m)
    assert float(jnp.max(jnp.abs(z - z_ref))) < 5e-2
    assert float(jnp.max(jnp.abs(z_recon - zr_ref))) < 5e-2
    assert float(jnp.max(jnp.abs(x_recon - xr_ref))) < 5e-2

    print("KERNEL_OK")
</pallas_src>

<mosaic_0001>
module attributes {stable_mosaic.version = 11 : i64} {
  func.func @kernel(%arg0: i32, %arg1: memref<8x256xf32, #tpu.memory_space<vmem>>, %arg2: memref<8x256xf32, #tpu.memory_space<vmem>>, %arg3: memref<8x8xf32, #tpu.memory_space<vmem>>, %arg4: memref<256x512xbf16, #tpu.memory_space<vmem>>, %arg5: memref<1x512xf32, #tpu.memory_space<vmem>>, %arg6: memref<512x256xbf16, #tpu.memory_space<vmem>>, %arg7: memref<1x256xf32, #tpu.memory_space<vmem>>, %arg8: memref<256x512xbf16, #tpu.memory_space<vmem>>, %arg9: memref<1x512xf32, #tpu.memory_space<vmem>>, %arg10: memref<512x256xbf16, #tpu.memory_space<vmem>>, %arg11: memref<1x256xf32, #tpu.memory_space<vmem>>, %arg12: memref<8x256xf32, #tpu.memory_space<vmem>>, %arg13: memref<8x256xf32, #tpu.memory_space<vmem>>, %arg14: memref<8x256xf32, #tpu.memory_space<vmem>>) attributes {dimension_semantics = [#tpu.dimension_semantics<arbitrary>], iteration_bounds = array<i64: 1>, scalar_prefetch = 0 : i64, scratch_operands = 0 : i64, tpu.core_type = #tpu.core_type<tc>, window_params = [{pipeline_mode = #tpu.pipeline_mode<synchronous>, transform_indices = @transform_0, window_bounds = array<i64: 8, 256>}, {pipeline_mode = #tpu.pipeline_mode<synchronous>, transform_indices = @transform_1, window_bounds = array<i64: 8, 256>}, {pipeline_mode = #tpu.pipeline_mode<synchronous>, transform_indices = @transform_2, window_bounds = array<i64: 8, 8>}, {pipeline_mode = #tpu.pipeline_mode<synchronous>, transform_indices = @transform_3, window_bounds = array<i64: 256, 512>}, {pipeline_mode = #tpu.pipeline_mode<synchronous>, transform_indices = @transform_4, window_bounds = array<i64: 1, 512>}, {pipeline_mode = #tpu.pipeline_mode<synchronous>, transform_indices = @transform_5, window_bounds = array<i64: 512, 256>}, {pipeline_mode = #tpu.pipeline_mode<synchronous>, transform_indices = @transform_6, window_bounds = array<i64: 1, 256>}, {pipeline_mode = #tpu.pipeline_mode<synchronous>, transform_indices = @transform_7, window_bounds = array<i64: 256, 512>}, {pipeline_mode = #tpu.pipeline_mode<synchronous>, transform_indices = @transform_8, window_bounds = array<i64: 1, 512>}, {pipeline_mode = #tpu.pipeline_mode<synchronous>, transform_indices = @transform_9, window_bounds = array<i64: 512, 256>}, {pipeline_mode = #tpu.pipeline_mode<synchronous>, transform_indices = @transform_10, window_bounds = array<i64: 1, 256>}, {pipeline_mode = #tpu.pipeline_mode<synchronous>, transform_indices = @transform_11, window_bounds = array<i64: 8, 256>}, {pipeline_mode = #tpu.pipeline_mode<synchronous>, transform_indices = @transform_12, window_bounds = array<i64: 8, 256>}, {pipeline_mode = #tpu.pipeline_mode<synchronous>, transform_indices = @transform_13, window_bounds = array<i64: 8, 256>}]} {
    %c0 = arith.constant 0 : index
    %c0_0 = arith.constant 0 : index
    %0 = vector.load %arg1[%c0, %c0_0] : memref<8x256xf32, #tpu.memory_space<vmem>>, vector<8x256xf32>
    %1 = arith.truncf %0 : vector<8x256xf32> to vector<8x256xbf16>
    %c0_1 = arith.constant 0 : index
    %c0_2 = arith.constant 0 : index
    %2 = vector.load %arg4[%c0_1, %c0_2] : memref<256x512xbf16, #tpu.memory_space<vmem>>, vector<256x512xbf16>
    %cst = arith.constant dense<0.000000e+00> : vector<8x512xf32>
    %3 = tpu.matmul %1, %2, %cst {dimension_numbers = #tpu.dot_dimension_numbers<[1], [0], [0], [1], [0, 0, 1, 1], [], []>} : vector<8x256xbf16>, vector<256x512xbf16>, vector<8x512xf32> -> vector<8x512xf32>
    %c0_3 = arith.constant 0 : index
    %c0_4 = arith.constant 0 : index
    %4 = vector.load %arg5[%c0_3, %c0_4] : memref<1x512xf32, #tpu.memory_space<vmem>>, vector<1x512xf32>
    %5 = vector.broadcast %4 : vector<1x512xf32> to vector<8x512xf32>
    %6 = arith.addf %3, %5 : vector<8x512xf32>
    %cst_5 = arith.constant 0.000000e+00 : f32
    %7 = vector.broadcast %cst_5 : f32 to vector<8x512xf32>
    %8 = arith.maximumf %6, %7 : vector<8x512xf32>
    %9 = arith.truncf %8 : vector<8x512xf32> to vector<8x512xbf16>
    %c0_6 = arith.constant 0 : index
    %c0_7 = arith.constant 0 : index
    %10 = vector.load %arg6[%c0_6, %c0_7] : memref<512x256xbf16, #tpu.memory_space<vmem>>, vector<512x256xbf16>
    %cst_8 = arith.constant dense<0.000000e+00> : vector<8x256xf32>
    %11 = tpu.matmul %9, %10, %cst_8 {dimension_numbers = #tpu.dot_dimension_numbers<[1], [0], [0], [1], [0, 0, 1, 1], [], []>} : vector<8x512xbf16>, vector<512x256xbf16>, vector<8x256xf32> -> vector<8x256xf32>
    %c0_9 = arith.constant 0 : index
    %c0_10 = arith.constant 0 : index
    %12 = vector.load %arg7[%c0_9, %c0_10] : memref<1x256xf32, #tpu.memory_space<vmem>>, vector<1x256xf32>
    %13 = vector.broadcast %12 : vector<1x256xf32> to vector<8x256xf32>
    %14 = arith.addf %11, %13 : vector<8x256xf32>
    %cst_11 = arith.constant 0.000000e+00 : f32
    %15 = vector.broadcast %cst_11 : f32 to vector<8x256xf32>
    %16 = arith.maximumf %14, %15 : vector<8x256xf32>
    %c0_12 = arith.constant 0 : index
    %c0_13 = arith.constant 0 : index
    %17 = vector.load %arg13[%c0_12, %c0_13] : memref<8x256xf32, #tpu.memory_space<vmem>>, vector<8x256xf32>
    tpu.vector_store %arg13[%c0_12, %c0_13], %16 {strides = array<i32>} : memref<8x256xf32, #tpu.memory_space<vmem>>, vector<8x256xf32>,
    %c0_14 = arith.constant 0 : index
    %c0_15 = arith.constant 0 : index
    %18 = vector.load %arg3[%c0_14, %c0_15] : memref<8x8xf32, #tpu.memory_space<vmem>>, vector<8x8xf32>
    %c0_16 = arith.constant 0 : index
    %c0_17 = arith.constant 0 : index
    %19 = vector.load %arg2[%c0_16, %c0_17] : memref<8x256xf32, #tpu.memory_space<vmem>>, vector<8x256xf32>
    %cst_18 = arith.constant dense<0.000000e+00> : vector<8x256xf32>
    %20 = tpu.matmul %18, %19, %cst_18 {dimension_numbers = #tpu.dot_dimension_numbers<[1], [0], [0], [1], [0, 0, 1, 1], [], []>} : vector<8x8xf32>, vector<8x256xf32>, vector<8x256xf32> -> vector<8x256xf32>
    %c0_19 = arith.constant 0 : index
    %c0_20 = arith.constant 0 : index
    %21 = vector.load %arg14[%c0_19, %c0_20] : memref<8x256xf32, #tpu.memory_space<vmem>>, vector<8x256xf32>
    tpu.vector_store %arg14[%c0_19, %c0_20], %20 {strides = array<i32>} : memref<8x256xf32, #tpu.memory_space<vmem>>, vector<8x256xf32>,
    %22 = arith.truncf %20 : vector<8x256xf32> to vector<8x256xbf16>
    %c0_21 = arith.constant 0 : index
    %c0_22 = arith.constant 0 : index
    %23 = vector.load %arg8[%c0_21, %c0_22] : memref<256x512xbf16, #tpu.memory_space<vmem>>, vector<256x512xbf16>
    %cst_23 = arith.constant dense<0.000000e+00> : vector<8x512xf32>
    %24 = tpu.matmul %22, %23, %cst_23 {dimension_numbers = #tpu.dot_dimension_numbers<[1], [0], [0], [1], [0, 0, 1, 1], [], []>} : vector<8x256xbf16>, vector<256x512xbf16>, vector<8x512xf32> -> vector<8x512xf32>
    %c0_24 = arith.constant 0 : index
    %c0_25 = arith.constant 0 : index
    %25 = vector.load %arg9[%c0_24, %c0_25] : memref<1x512xf32, #tpu.memory_space<vmem>>, vector<1x512xf32>
    %26 = vector.broadcast %25 : vector<1x512xf32> to vector<8x512xf32>
    %27 = arith.addf %24, %26 : vector<8x512xf32>
    %cst_26 = arith.constant 0.000000e+00 : f32
    %28 = vector.broadcast %cst_26 : f32 to vector<8x512xf32>
    %29 = arith.maximumf %27, %28 : vector<8x512xf32>
    %30 = arith.truncf %29 : vector<8x512xf32> to vector<8x512xbf16>
    %c0_27 = arith.constant 0 : index
    %c0_28 = arith.constant 0 : index
    %31 = vector.load %arg10[%c0_27, %c0_28] : memref<512x256xbf16, #tpu.memory_space<vmem>>, vector<512x256xbf16>
    %cst_29 = arith.constant dense<0.000000e+00> : vector<8x256xf32>
    %32 = tpu.matmul %30, %31, %cst_29 {dimension_numbers = #tpu.dot_dimension_numbers<[1], [0], [0], [1], [0, 0, 1, 1], [], []>} : vector<8x512xbf16>, vector<512x256xbf16>, vector<8x256xf32> -> vector<8x256xf32>
    %c0_30 = arith.constant 0 : index
    %c0_31 = arith.constant 0 : index
    %33 = vector.load %arg11[%c0_30, %c0_31] : memref<1x256xf32, #tpu.memory_space<vmem>>, vector<1x256xf32>
    %34 = vector.broadcast %33 : vector<1x256xf32> to vector<8x256xf32>
    %35 = arith.addf %32, %34 : vector<8x256xf32>
    %cst_32 = arith.constant 0.000000e+00 : f32
    %36 = vector.broadcast %cst_32 : f32 to vector<8x256xf32>
    %37 = arith.maximumf %35, %36 : vector<8x256xf32>
    %c0_33 = arith.constant 0 : index
    %c0_34 = arith.constant 0 : index
    %38 = vector.load %arg12[%c0_33, %c0_34] : memref<8x256xf32, #tpu.memory_space<vmem>>, vector<8x256xf32>
    tpu.vector_store %arg12[%c0_33, %c0_34], %37 {strides = array<i32>} : memref<8x256xf32, #tpu.memory_space<vmem>>, vector<8x256xf32>,
    return
  }
  func.func @transform_0(%arg0: i32) -> (i32, i32) {
    %c0_i32 = arith.constant 0 : i32
    %c0_i32_0 = arith.constant 0 : i32
    %c0_i32_1 = arith.constant 0 : i32
    return %c0_i32, %c0_i32_0 : i32, i32
  }
  func.func @transform_1(%arg0: i32) -> (i32, i32) {
    %c0_i32 = arith.constant 0 : i32
    %c0_i32_0 = arith.constant 0 : i32
    %c0_i32_1 = arith.constant 0 : i32
    return %c0_i32, %c0_i32_0 : i32, i32
  }
  func.func @transform_2(%arg0: i32) -> (i32, i32) {
    %c0_i32 = arith.constant 0 : i32
    %c0_i32_0 = arith.constant 0 : i32
    %c0_i32_1 = arith.constant 0 : i32
    return %c0_i32, %c0_i32_0 : i32, i32
  }
  func.func @transform_3(%arg0: i32) -> (i32, i32) {
    %c0_i32 = arith.constant 0 : i32
    %c0_i32_0 = arith.constant 0 : i32
    %c0_i32_1 = arith.constant 0 : i32
    return %c0_i32, %c0_i32_0 : i32, i32
  }
  func.func @transform_4(%arg0: i32) -> (i32, i32) {
    %c0_i32 = arith.constant 0 : i32
    %c0_i32_0 = arith.constant 0 : i32
    %c0_i32_1 = arith.constant 0 : i32
    return %c0_i32, %c0_i32_0 : i32, i32
  }
  func.func @transform_5(%arg0: i32) -> (i32, i32) {
    %c0_i32 = arith.constant 0 : i32
    %c0_i32_0 = arith.constant 0 : i32
    %c0_i32_1 = arith.constant 0 : i32
    return %c0_i32, %c0_i32_0 : i32, i32
  }
  func.func @transform_6(%arg0: i32) -> (i32, i32) {
    %c0_i32 = arith.constant 0 : i32
    %c0_i32_0 = arith.constant 0 : i32
    %c0_i32_1 = arith.constant 0 : i32
    return %c0_i32, %c0_i32_0 : i32, i32
  }
  func.func @transform_7(%arg0: i32) -> (i32, i32) {
    %c0_i32 = arith.constant 0 : i32
    %c0_i32_0 = arith.constant 0 : i32
    %c0_i32_1 = arith.constant 0 : i32
    return %c0_i32, %c0_i32_0 : i32, i32
  }
  func.func @transform_8(%arg0: i32) -> (i32, i32) {
    %c0_i32 = arith.constant 0 : i32
    %c0_i32_0 = arith.constant 0 : i32
    %c0_i32_1 = arith.constant 0 : i32
    return %c0_i32, %c0_i32_0 : i32, i32
  }
  func.func @transform_9(%arg0: i32) -> (i32, i32) {
    %c0_i32 = arith.constant 0 : i32
    %c0_i32_0 = arith.constant 0 : i32
    %c0_i32_1 = arith.constant 0 : i32
    return %c0_i32, %c0_i32_0 : i32, i32
  }
  func.func @transform_10(%arg0: i32) -> (i32, i32) {
    %c0_i32 = arith.constant 0 : i32
    %c0_i32_0 = arith.constant 0 : i32
    %c0_i32_1 = arith.constant 0 : i32
    return %c0_i32, %c0_i32_0 : i32, i32
  }
  func.func @transform_11(%arg0: i32) -> (i32, i32) {
    %c0_i32 = arith.constant 0 : i32
    %c0_i32_0 = arith.constant 0 : i32
    %c0_i32_1 = arith.constant 0 : i32
    return %c0_i32, %c0_i32_0 : i32, i32
  }
  func.func @transform_12(%arg0: i32) -> (i32, i32) {
    %c0_i32 = arith.constant 0 : i32
    %c0_i32_0 = arith.constant 0 : i32
    %c0_i32_1 = arith.constant 0 : i32
    return %c0_i32, %c0_i32_0 : i32, i32
  }
  func.func @transform_13(%arg0: i32) -> (i32, i32) {
    %c0_i32 = arith.constant 0 : i32
    %c0_i32_0 = arith.constant 0 : i32
    %c0_i32_1 = arith.constant 0 : i32
    return %c0_i32, %c0_i32_0 : i32, i32
  }
}

</mosaic_0001>

<bundles_post_ra>
// kernel: dscnet_forward.1
= control target key start
LH: loop header
LB: loop body
LE: loop exit
PB: predicated region body
PF: predicated region fallthrough
CT: control target
= control target key end

     0   :  { %19 = vsyncpa [#allocation3], 0  ;;  %s3230_s0 = inlined_call_operand.vmem [shape: f32[8,256], index: 0, kind: input, shape index: {}]   ;;  %s3231_s1 = inlined_call_operand.vmem [shape: f32[8,256], index: 1, kind: input, shape index: {}]   ;;  %s3232_s2 = inlined_call_operand.vmem [shape: f32[8,8], index: 2, kind: input, shape index: {}]   ;;  %s3233_s3 = inlined_call_operand.hbm [shape: bf16[256,512], index: 3, kind: input, shape index: {}]   ;;  %s3234_s4 = inlined_call_operand.vmem [shape: f32[1,512], index: 4, kind: input, shape index: {}]   ;;  %s3235_s5 = inlined_call_operand.hbm [shape: bf16[512,256], index: 5, kind: input, shape index: {}]   ;;  %s3236_s6 = inlined_call_operand.vmem [shape: f32[1,256], index: 6, kind: input, shape index: {}]   ;;  %s3237_s7 = inlined_call_operand.hbm [shape: bf16[256,512], index: 7, kind: input, shape index: {}]   ;;  %s3238_s8 = inlined_call_operand.vmem [shape: f32[1,512], index: 8, kind: input, shape index: {}]   ;;  %s3239_s9 = inlined_call_operand.hbm [shape: bf16[512,256], index: 9, kind: input, shape index: {}]   ;;  %s3240_s10 = inlined_call_operand.vmem [shape: f32[1,256], index: 10, kind: input, shape index: {}]   ;;  %s3241_s11 = inlined_call_operand.vmem [shape: f32[8,256], index: 11, kind: output, shape index: {0}]   ;;  %s3242_s12 = inlined_call_operand.hbm [shape: f32[8,256], index: 12, kind: output, shape index: {1}]   ;;  %s3243_s13 = inlined_call_operand.hbm [shape: f32[8,256], index: 13, kind: output, shape index: {2}]  }
   0x1   :  { %20 = vsyncpa [#allocation6], 0 }
   0x2   :  { %21 = vsyncpa [#allocation9], 0 }
   0x3   :  { %22 = vsyncpa [#allocation4], 0 }
   0x4   :  { %23 = vsyncpa [#allocation12], 0  ;;  %s2981_s25 = smov [#allocation5]   ;;  %s2839_s29 = scalar_lea.hbm %s3235_s5, 8192 }
   0x5   :  { %s49_s26 = sshll.u32 %s2981_s25, 4  ;;  %p2840_p0 = scmp.ne.s32.totalorder %s3235_s5, %s2839_s29  ;;  %s50_s26 = int_to_ptr.vmem [resolvable:$true] %s49_s26 }
   0x6   :  { %p2843_p1 = scmp.lt.u32.totalorder %s2839_s29, %s3235_s5 }
   0x8   :  { %p2845_p2 = pnand %p2843_p1, %p2840_p0 }
   0xa   :  { %2848 = shalt.err (!%p2845_p2)
}
   0xb   :  { %s2849_s17 = scalar_lea.vmem %s50_s26, 8192  ;;  %p2854_p4 = scmp.lt.s32.totalorder %s50_s26, %s50_s26 }
   0xc   :  { %p2850_p3 = scmp.ne.s32.totalorder %s50_s26, %s2849_s17  ;;  %p2855_p5 = scmp.lt.s32.totalorder %s2849_s17, %s2849_s17 }
   0xe   :  { %p2856_p6 = por %p2855_p5, %p2854_p4 }
  0x10   :  { %p2857_p7 = pnand %p2856_p6, %p2850_p3 }
  0x12   :  { %2860 = shalt.err (!%p2857_p7)
}
  0x13   :  { %s2982_s18 = smov 128   ;;  %s2983_s19 = smov 8  }
  0x14   :  { %55 = dma.hbm_to_vmem [thread:$0]  %s3235_s5, 8192, %s50_s26, [#allocation6], %s2982_s18, %s2982_s18, %s2983_s19  }
  0x15   :  { %s2984_s22 = smov [#allocation2]   ;;  %s2861_s27 = scalar_lea.hbm %s3233_s3, 8192 }
  0x16   :  { %s35_s23 = sshll.u32 %s2984_s22, 4  ;;  %p2862_p8 = scmp.ne.s32.totalorder %s3233_s3, %s2861_s27  ;;  %s36_s23 = int_to_ptr.vmem [resolvable:$true] %s35_s23 }
  0x17   :  { %p2865_p9 = scmp.lt.u32.totalorder %s2861_s27, %s3233_s3 }
  0x19   :  { %p2867_p10 = pnand %p2865_p9, %p2862_p8 }
  0x1b   :  { %2870 = shalt.err (!%p2867_p10)
}
  0x1c   :  { %s2871_s15 = scalar_lea.vmem %s36_s23, 8192  ;;  %p2876_p12 = scmp.lt.s32.totalorder %s36_s23, %s36_s23 }
  0x1d   :  { %p2872_p11 = scmp.ne.s32.totalorder %s36_s23, %s2871_s15  ;;  %p2877_p13 = scmp.lt.s32.totalorder %s2871_s15, %s2871_s15 }
  0x1f   :  { %p2878_p0 = por %p2877_p13, %p2876_p12 }
  0x21   :  { %p2879_p1 = pnand %p2878_p0, %p2872_p11 }
  0x23   :  { %2882 = shalt.err (!%p2879_p1)
}
  0x24   :  { %s2985_s5 = smov 256   ;;  %s2986_s26 = smov 16  }
  0x25   :  { %41 = dma.hbm_to_vmem [thread:$0]  %s3233_s3, 8192, %s36_s23, [#allocation3], %s2985_s5, %s2985_s5, %s2986_s26  }
  0x26   :  { %s2987_s20 = smov [#allocation7]   ;;  %s2988_s22 = smov [#allocation8]  }
  0x27   :  { %s63_s21 = sshll.u32 %s2987_s20, 4  ;;  %s77_s24 = sshll.u32 %s2988_s22, 4  ;;  %s64_s21 = int_to_ptr.vmem [resolvable:$true] %s63_s21  ;;  %s3089_s24 = int_to_ptr.vmem [resolvable:$true] %s77_s24 }
  0x28   :  { %s2883_s28 = scalar_lea.hbm %s3237_s7, 8192 }
  0x29   :  { %p2884_p2 = scmp.ne.s32.totalorder %s3237_s7, %s2883_s28  ;;  %p2887_p3 = scmp.lt.u32.totalorder %s2883_s28, %s3237_s7 }
  0x2b   :  { %p2889_p4 = pnand %p2887_p3, %p2884_p2 }
  0x2d   :  { %2892 = shalt.err (!%p2889_p4)
}
  0x2e   :  { %s2893_s3 = scalar_lea.vmem %s64_s21, 8192  ;;  %p2898_p6 = scmp.lt.s32.totalorder %s64_s21, %s64_s21 }
  0x2f   :  { %p2894_p5 = scmp.ne.s32.totalorder %s64_s21, %s2893_s3  ;;  %p2899_p7 = scmp.lt.s32.totalorder %s2893_s3, %s2893_s3 }
  0x31   :  { %p2900_p8 = por %p2899_p7, %p2898_p6 }
  0x33   :  { %p2901_p9 = pnand %p2900_p8, %p2894_p5 }
  0x35   :  { %2904 = shalt.err (!%p2901_p9)
}
  0x36   :  { %69 = dma.hbm_to_vmem [thread:$0]  %s3237_s7, 8192, %s64_s21, [#allocation6], %s2985_s5, %s2985_s5, %s2986_s26  }
  0x37   :  { %s2905_s22 = scalar_lea.hbm %s3239_s9, 8192 }
  0x38   :  { %p2906_p10 = scmp.ne.s32.totalorder %s3239_s9, %s2905_s22  ;;  %p2909_p11 = scmp.lt.u32.totalorder %s2905_s22, %s3239_s9 }
  0x3a   :  { %p2911_p12 = pnand %p2909_p11, %p2906_p10 }
  0x3c   :  { %2914 = shalt.err (!%p2911_p12)
}
  0x3d   :  { %s2915_s30 = scalar_lea.vmem %s3089_s24, 8192  ;;  %p2920_p0 = scmp.lt.s32.totalorder %s3089_s24, %s3089_s24 }
  0x3e   :  { %p2916_p13 = scmp.ne.s32.totalorder %s3089_s24, %s2915_s30  ;;  %p2921_p1 = scmp.lt.s32.totalorder %s2915_s30, %s2915_s30 }
  0x40   :  { %p2922_p2 = por %p2921_p1, %p2920_p0 }
  0x42   :  { %p2923_p3 = pnand %p2922_p2, %p2916_p13 }
  0x44   :  { %2926 = shalt.err (!%p2923_p3)
}
  0x45   :  { %83 = dma.hbm_to_vmem [thread:$0]  %s3239_s9, 8192, %s3089_s24, [#allocation9], %s2982_s18, %s2982_s18, %s2983_s19  }
  0x46   :  { %2971 = dma.done.wait [#allocation3], 8192  }
  0x47   :  { %2972 = vsyncadd [#allocation3], 4294959104 }
  0x48   :  { %2973 = dma.done.wait [#allocation6], 16384  }
  0x49   :  { %2974 = vsyncadd [#allocation6], 4294950912 }
  0x4a   :  { %2975 = dma.done.wait [#allocation9], 8192  }
  0x4b   :  { %2976 = vsyncadd [#allocation9], 4294959104  ;;  %v2455_v0 = vld [vmem:[#allocation2 + $0x4] ss:$16 sps:$4 sm:$0xff]   ;;  %v2457_v1 = vld [vmem:[#allocation2] ss:$16 sps:$4 sm:$0xff]  }
  0x4c   :  { %508 = vmatprep.subr.bf16.mxu1 %v2455_v0  ;;  %v2458_v2 = vld [vmem:[#allocation2 + $0x24] ss:$16 sps:$4 sm:$0xff]   ;;  %v2460_v3 = vld [vmem:[#allocation2 + $0x20] ss:$16 sps:$4 sm:$0xff]   ;;  %v99_v13 = vld [vmem:[%s3230_s0 + $0x8] sm:$0xff]  ;;  %vm1083_vm0 = vcmask 64512  }
  0x4d   :  { %509 = vmatpush1.bf16.msra.mxu1 %v2457_v1  ;;  %v2461_v4 = vld [vmem:[#allocation2 + $0x44] ss:$16 sps:$4 sm:$0xff]   ;;  %v2463_v5 = vld [vmem:[#allocation2 + $0x40] ss:$16 sps:$4 sm:$0xff]   ;;  %v3126_v14 = vpack.c.bf16 %v99_v13, %v99_v13  ;;  %v2505_v44 = vld [vmem:[#allocation2 + $0xc] ss:$16 sps:$4 sm:$0xff]  }
  0x4e   :  { %510 = vmatprep.subr.bf16.mxu1 %v2458_v2  ;;  %v2464_v6 = vld [vmem:[#allocation2 + $0x64] ss:$16 sps:$4 sm:$0xff]   ;;  %v2466_v7 = vld [vmem:[#allocation2 + $0x60] ss:$16 sps:$4 sm:$0xff]   ;;  %v2503_v46 = vld [vmem:[#allocation2 + $0x8] ss:$16 sps:$4 sm:$0xff]  }
  0x4f   :  { %v2467_v8 = vld [vmem:[#allocation2 + $0x84] ss:$16 sps:$4 sm:$0xff]   ;;  %v2469_v9 = vld [vmem:[#allocation2 + $0x80] ss:$16 sps:$4 sm:$0xff]   ;;  %540 = vmatprep.mubr.bf16.mxu1 %v3126_v14  ;;  %v2508_v49 = vld [vmem:[#allocation2 + $0x2c] ss:$16 sps:$4 sm:$0xff]  }
  0x50   :  { %v2470_v10 = vld [vmem:[#allocation2 + $0xa4] ss:$16 sps:$4 sm:$0xff]   ;;  %v2472_v11 = vld [vmem:[#allocation2 + $0xa0] ss:$16 sps:$4 sm:$0xff]   ;;  %v2506_v52 = vld [vmem:[#allocation2 + $0x28] ss:$16 sps:$4 sm:$0xff]  }
  0x51   :  { %511 = vmatpush1.bf16.msra.mxu1 %v2460_v3  ;;  %v2473_v12 = vld [vmem:[#allocation2 + $0xc4] ss:$16 sps:$4 sm:$0xff]   ;;  %v2475_v15 = vld [vmem:[#allocation2 + $0xc0] ss:$16 sps:$4 sm:$0xff]   ;;  %v2511_v53 = vld [vmem:[#allocation2 + $0x4c] ss:$16 sps:$4 sm:$0xff]  }
  0x52   :  { %512 = vmatprep.subr.bf16.mxu1 %v2461_v4  ;;  %v2476_v16 = vld [vmem:[#allocation2 + $0xe4] ss:$16 sps:$4 sm:$0xff]   ;;  %v2478_v17 = vld [vmem:[#allocation2 + $0xe0] ss:$16 sps:$4 sm:$0xff]   ;;  %v2509_v56 = vld [vmem:[#allocation2 + $0x48] ss:$16 sps:$4 sm:$0xff]  }
  0x53   :  { %v2479_v18 = vld [vmem:[#allocation2 + $0x104] ss:$16 sps:$4 sm:$0xff]   ;;  %v2481_v19 = vld [vmem:[#allocation2 + $0x100] ss:$16 sps:$4 sm:$0xff]   ;;  %v2514_v57 = vld [vmem:[#allocation2 + $0x6c] ss:$16 sps:$4 sm:$0xff]  }
  0x54   :  { %v2482_v20 = vld [vmem:[#allocation2 + $0x124] ss:$16 sps:$4 sm:$0xff]   ;;  %v2484_v21 = vld [vmem:[#allocation2 + $0x120] ss:$16 sps:$4 sm:$0xff]   ;;  %v2512_v60 = vld [vmem:[#allocation2 + $0x68] ss:$16 sps:$4 sm:$0xff]  }
  0x55   :  { %513 = vmatpush1.bf16.msra.mxu1 %v2463_v5  ;;  %v2485_v22 = vld [vmem:[#allocation2 + $0x144] ss:$16 sps:$4 sm:$0xff]   ;;  %v2487_v23 = vld [vmem:[#allocation2 + $0x140] ss:$16 sps:$4 sm:$0xff]   ;;  %v2517_v61 = vld [vmem:[#allocation2 + $0x8c] ss:$16 sps:$4 sm:$0xff]  }
  0x56   :  { %514 = vmatprep.subr.bf16.mxu1 %v2464_v6  ;;  %v2488_v24 = vld [vmem:[#allocation2 + $0x164] ss:$16 sps:$4 sm:$0xff]   ;;  %v2490_v25 = vld [vmem:[#allocation2 + $0x160] ss:$16 sps:$4 sm:$0xff]   ;;  %v2515_v0 = vld [vmem:[#allocation2 + $0x88] ss:$16 sps:$4 sm:$0xff]  }
  0x57   :  { %v2491_v26 = vld [vmem:[#allocation2 + $0x184] ss:$16 sps:$4 sm:$0xff]   ;;  %v2553_v28 = vld [vmem:[#allocation5] ss:$8 sps:$4 sm:$0xff]   ;;  %v2556_v32 = vld [vmem:[#allocation5 + $0x10] ss:$8 sps:$4 sm:$0xff]  }
  0x58   :  { %v2551_v27 = vld [vmem:[#allocation5 + $0x4] ss:$8 sps:$4 sm:$0xff]   ;;  %v2493_v29 = vld [vmem:[#allocation2 + $0x180] ss:$16 sps:$4 sm:$0xff]   ;;  %v2554_v30 = vld [vmem:[#allocation5 + $0x14] ss:$8 sps:$4 sm:$0xff]  }
  0x59   :  { %515 = vmatpush1.bf16.msra.mxu1 %v2466_v7  ;;  %v2494_v31 = vld [vmem:[#allocation2 + $0x1a4] ss:$16 sps:$4 sm:$0xff]   ;;  %994 = vmatprep.subr.bf16.mxu0 %v2551_v27  ;;  %v2496_v34 = vld [vmem:[#allocation2 + $0x1a0] ss:$16 sps:$4 sm:$0xff]   ;;  %v2520_v1 = vld [vmem:[#allocation2 + $0xac] ss:$16 sps:$4 sm:$0xff]  }
  0x5a   :  { %516 = vmatprep.subr.bf16.mxu1 %v2467_v8  ;;  %995 = vmatpush1.bf16.msra.mxu0 %v2553_v28  ;;  %v2557_v33 = vld [vmem:[#allocation5 + $0x24] ss:$8 sps:$4 sm:$0xff]   ;;  %v2559_v36 = vld [vmem:[#allocation5 + $0x20] ss:$8 sps:$4 sm:$0xff]   ;;  %v2560_v37 = vld [vmem:[#allocation5 + $0x34] ss:$8 sps:$4 sm:$0xff]  }
  0x5b   :  { %996 = vmatprep.subr.bf16.mxu0 %v2554_v30  ;;  %v2497_v35 = vld [vmem:[#allocation2 + $0x1c4] ss:$16 sps:$4 sm:$0xff]   ;;  %v2499_v38 = vld [vmem:[#allocation2 + $0x1c0] ss:$16 sps:$4 sm:$0xff]   ;;  %v2518_v4 = vld [vmem:[#allocation2 + $0xa8] ss:$16 sps:$4 sm:$0xff]  }
  0x5c   :  { %v2500_v39 = vld [vmem:[#allocation2 + $0x1e4] ss:$16 sps:$4 sm:$0xff]   ;;  %v2562_v40 = vld [vmem:[#allocation5 + $0x30] ss:$8 sps:$4 sm:$0xff]   ;;  %v2565_v45 = vld [vmem:[#allocation5 + $0x40] ss:$8 sps:$4 sm:$0xff]  }
  0x5d   :  { %517 = vmatpush1.bf16.msra.mxu1 %v2469_v9  ;;  %v2563_v41 = vld [vmem:[#allocation5 + $0x44] ss:$8 sps:$4 sm:$0xff]   ;;  %v2502_v42 = vld [vmem:[#allocation2 + $0x1e0] ss:$16 sps:$4 sm:$0xff]   ;;  %v2566_v47 = vld [vmem:[#allocation5 + $0x54] ss:$8 sps:$4 sm:$0xff]  }
  0x5e   :  { %518 = vmatprep.subr.bf16.mxu1 %v2470_v10  ;;  %997 = vmatpush1.bf16.msra.mxu0 %v2556_v32  ;;  %v98_v43 = vld [vmem:[%s3230_s0] sm:$0xff]  ;;  %v2568_v50 = vld [vmem:[#allocation5 + $0x50] ss:$8 sps:$4 sm:$0xff]   ;;  %v2572_v55 = vld [vmem:[#allocation5 + $0x74] ss:$8 sps:$4 sm:$0xff]   ;;  %s2991_s20 = smov [#allocation11]  }
  0x5f   :  { %998 = vmatprep.subr.bf16.mxu0 %v2557_v33  ;;  %v3132_v48 = vpack.c.bf16 %v98_v43, %v98_v43  ;;  %v2569_v51 = vld [vmem:[#allocation5 + $0x64] ss:$8 sps:$4 sm:$0xff]   ;;  %v2571_v54 = vld [vmem:[#allocation5 + $0x60] ss:$8 sps:$4 sm:$0xff]   ;;  %v2574_v58 = vld [vmem:[#allocation5 + $0x70] ss:$8 sps:$4 sm:$0xff]  }
  0x60   :  { %v2575_v59 = vld [vmem:[#allocation5 + $0x84] ss:$8 sps:$4 sm:$0xff]   ;;  %v2577_v62 = vld [vmem:[#allocation5 + $0x80] ss:$8 sps:$4 sm:$0xff]   ;;  %v2578_v63 = vld [vmem:[#allocation5 + $0x94] ss:$8 sps:$4 sm:$0xff]  }
  0x61   :  { %519 = vmatpush1.bf16.msra.mxu1 %v2472_v11  ;;  %v2580_v2 = vld [vmem:[#allocation5 + $0x90] ss:$8 sps:$4 sm:$0xff]   ;;  %v2581_v3 = vld [vmem:[#allocation5 + $0xa4] ss:$8 sps:$4 sm:$0xff]   ;;  %v2583_v6 = vld [vmem:[#allocation5 + $0xa0] ss:$8 sps:$4 sm:$0xff]  }
  0x62   :  { %520 = vmatprep.subr.bf16.mxu1 %v2473_v12  ;;  %999 = vmatpush1.bf16.msra.mxu0 %v2559_v36  ;;  %v2523_v5 = vld [vmem:[#allocation2 + $0xcc] ss:$16 sps:$4 sm:$0xff]   ;;  %v2521_v8 = vld [vmem:[#allocation2 + $0xc8] ss:$16 sps:$4 sm:$0xff]   ;;  %v1081_v33 = vld [vmem:[%s3231_s1] sm:$0xff]  ;;  %s2158_s22 = sshll.u32 %s2991_s20, 4  ;;  %s2159_s22 = int_to_ptr.vmem [resolvable:$true] %s2158_s22 }
  0x63   :  { %1000 = vmatprep.subr.bf16.mxu0 %v2560_v37  ;;  %v2584_v7 = vld [vmem:[#allocation5 + $0xb4] ss:$8 sps:$4 sm:$0xff]   ;;  %v2586_v10 = vld [vmem:[#allocation5 + $0xb0] ss:$8 sps:$4 sm:$0xff]   ;;  %v2587_v11 = vld [vmem:[#allocation5 + $0xc4] ss:$8 sps:$4 sm:$0xff]  }
  0x64   :  { %v2526_v9 = vld [vmem:[#allocation2 + $0xec] ss:$16 sps:$4 sm:$0xff]   ;;  %v2524_v12 = vld [vmem:[#allocation2 + $0xe8] ss:$16 sps:$4 sm:$0xff]   ;;  %v2608_v43 = vld [vmem:[#allocation7 + $0x20] ss:$16 sps:$4 sm:$0xff]  }
  0x65   :  { %521 = vmatpush1.bf16.msra.mxu1 %v2475_v15  ;;  %v2529_v13 = vld [vmem:[#allocation2 + $0x10c] ss:$16 sps:$4 sm:$0xff]   ;;  %v2542_v27 = vld [vmem:[#allocation2 + $0x1a8] ss:$16 sps:$4 sm:$0xff]  }
  0x66   :  { %522 = vmatprep.subr.bf16.mxu1 %v2476_v16  ;;  %1001 = vmatpush1.bf16.msra.mxu0 %v2562_v40  ;;  %v2590_v15 = vld [vmem:[#allocation5 + $0xd4] ss:$8 sps:$4 sm:$0xff]   ;;  %v2527_v16 = vld [vmem:[#allocation2 + $0x108] ss:$16 sps:$4 sm:$0xff]   ;;  %v2593_v36 = vld [vmem:[#allocation5 + $0xe4] ss:$8 sps:$4 sm:$0xff]  }
  0x67   :  { %1002 = vmatprep.subr.bf16.mxu0 %v2563_v41  ;;  %v2547_v28 = vld [vmem:[#allocation2 + $0x1cc] ss:$16 sps:$4 sm:$0xff]   ;;  %v2595_v37 = vld [vmem:[#allocation5 + $0xe0] ss:$8 sps:$4 sm:$0xff]  }
  0x68   :  { %v2550_v30 = vld [vmem:[#allocation2 + $0x1ec] ss:$16 sps:$4 sm:$0xff]   ;;  %v2602_v41 = vld [vmem:[#allocation7] ss:$16 sps:$4 sm:$0xff]  }
  0x69   :  { %523 = vmatpush1.bf16.msra.mxu1 %v2478_v17  ;;  %v2532_v17 = vld [vmem:[#allocation2 + $0x12c] ss:$16 sps:$4 sm:$0xff]  }
  0x6a   :  { %524 = vmatprep.subr.bf16.mxu1 %v2479_v18  ;;  %1003 = vmatpush1.bf16.msra.mxu0 %v2565_v45  ;;  %v2592_v18 = vld [vmem:[#allocation5 + $0xd0] ss:$8 sps:$4 sm:$0xff]   ;;  %v1082_v32 = vld [vmem:[%s3231_s1 + $0x8] sm:$0xff] }
  0x6b   :  { %1004 = vmatprep.subr.bf16.mxu0 %v2566_v47  ;;  %v2601_v40 = vld [vmem:[#allocation5 + $0x104] ss:$8 sps:$4 sm:$0xff]   ;;  %v2614_v45 = vld [vmem:[#allocation7 + $0x40] ss:$16 sps:$4 sm:$0xff]  }
  0x6c   :  { %v2620_v47 = vld [vmem:[#allocation7 + $0x60] ss:$16 sps:$4 sm:$0xff]  }
  0x6d   :  { %525 = vmatpush1.bf16.msra.mxu1 %v2481_v19  ;;  %v2530_v19 = vld [vmem:[#allocation2 + $0x128] ss:$16 sps:$4 sm:$0xff]  }
  0x6e   :  { %526 = vmatprep.subr.bf16.mxu1 %v2482_v20  ;;  %1005 = vmatpush1.bf16.msra.mxu0 %v2568_v50  ;;  %v2535_v20 = vld [vmem:[#allocation2 + $0x14c] ss:$16 sps:$4 sm:$0xff]   ;;  %v2628_v50 = vld [vmem:[#allocation7 + $0x84] ss:$16 sps:$4 sm:$0xff]  }
  0x6f   :  { %1006 = vmatprep.subr.bf16.mxu0 %v2569_v51  ;;  %v2632_v51 = vld [vmem:[#allocation7 + $0xa0] ss:$16 sps:$4 sm:$0xff]  }
  0x71   :  { %527 = vmatpush1.bf16.msra.mxu1 %v2484_v21  ;;  %v2533_v21 = vld [vmem:[#allocation2 + $0x148] ss:$16 sps:$4 sm:$0xff]  }
  0x72   :  { %528 = vmatprep.subr.bf16.mxu1 %v2485_v22  ;;  %1007 = vmatpush1.bf16.msra.mxu0 %v2571_v54  ;;  %v2538_v22 = vld [vmem:[#allocation2 + $0x16c] ss:$16 sps:$4 sm:$0xff]   ;;  %v2640_v54 = vld [vmem:[#allocation7 + $0xc4] ss:$16 sps:$4 sm:$0xff]  }
  0x73   :  { %1008 = vmatprep.subr.bf16.mxu0 %v2572_v55  ;;  %v2644_v55 = vld [vmem:[#allocation7 + $0xe0] ss:$16 sps:$4 sm:$0xff]  }
  0x75   :  { %529 = vmatpush1.bf16.msra.mxu1 %v2487_v23  ;;  %v2536_v23 = vld [vmem:[#allocation2 + $0x168] ss:$16 sps:$4 sm:$0xff]  }
  0x76   :  { %530 = vmatprep.subr.bf16.mxu1 %v2488_v24  ;;  %1009 = vmatpush1.bf16.msra.mxu0 %v2574_v58  ;;  %v2541_v24 = vld [vmem:[#allocation2 + $0x18c] ss:$16 sps:$4 sm:$0xff]   ;;  %v2652_v58 = vld [vmem:[#allocation7 + $0x104] ss:$16 sps:$4 sm:$0xff]  }
  0x77   :  { %1010 = vmatprep.subr.bf16.mxu0 %v2575_v59  ;;  %v2656_v59 = vld [vmem:[#allocation7 + $0x120] ss:$16 sps:$4 sm:$0xff]  }
  0x79   :  { %531 = vmatpush1.bf16.msra.mxu1 %v2490_v25  ;;  %v2539_v25 = vld [vmem:[#allocation2 + $0x188] ss:$16 sps:$4 sm:$0xff]  }
  0x7a   :  { %532 = vmatprep.subr.bf16.mxu1 %v2491_v26  ;;  %1011 = vmatpush1.bf16.msra.mxu0 %v2577_v62  ;;  %v2544_v26 = vld [vmem:[#allocation2 + $0x1ac] ss:$16 sps:$4 sm:$0xff]   ;;  %v2664_v62 = vld [vmem:[#allocation7 + $0x144] ss:$16 sps:$4 sm:$0xff]  }
  0x7b   :  { %1012 = vmatprep.subr.bf16.mxu0 %v2578_v63  ;;  %v2668_v63 = vld [vmem:[#allocation7 + $0x160] ss:$16 sps:$4 sm:$0xff]  }
  0x7d   :  { %533 = vmatpush1.bf16.msra.mxu1 %v2493_v29  ;;  %v2545_v29 = vld [vmem:[#allocation2 + $0x1c8] ss:$16 sps:$4 sm:$0xff]  }
  0x7e   :  { %534 = vmatprep.subr.bf16.mxu1 %v2494_v31  ;;  %1013 = vmatpush1.bf16.msra.mxu0 %v2580_v2  ;;  %v2548_v31 = vld [vmem:[#allocation2 + $0x1e8] ss:$16 sps:$4 sm:$0xff]   ;;  %v2676_v2 = vld [vmem:[#allocation7 + $0x184] ss:$16 sps:$4 sm:$0xff]  }
  0x7f   :  { %1014 = vmatprep.subr.bf16.mxu0 %v2581_v3  ;;  %v2682_v3 = vld [vmem:[#allocation7 + $0x1a4] ss:$16 sps:$4 sm:$0xff]  }
  0x81   :  { %535 = vmatpush1.bf16.msra.mxu1 %v2496_v34  ;;  %v2989_v34 = vmov 0.0  }
  0x82   :  { %536 = vmatprep.subr.bf16.mxu1 %v2497_v35  ;;  %1015 = vmatpush1.bf16.msra.mxu0 %v2583_v6  ;;  %v1080_v35 = vld [vmem:[%s3232_s2] sm:$0xff] }
  0x83   :  { %1016 = vmatprep.subr.bf16.mxu0 %v2584_v7  ;;  %v2686_v6 = vld [vmem:[#allocation7 + $0x1c0] ss:$16 sps:$4 sm:$0xff]   ;;  %v2694_v7 = vld [vmem:[#allocation7 + $0x1e4] ss:$16 sps:$4 sm:$0xff]  }
  0x85   :  { %537 = vmatpush1.bf16.msra.mxu1 %v2499_v38  ;;  %v2596_v38 = vld [vmem:[#allocation5 + $0xf4] ss:$8 sps:$4 sm:$0xff]  }
  0x86   :  { %538 = vmatprep.subr.bf16.mxu1 %v2500_v39  ;;  %1017 = vmatpush1.bf16.msra.mxu0 %v2586_v10  ;;  %v2598_v39 = vld [vmem:[#allocation5 + $0xf0] ss:$8 sps:$4 sm:$0xff]   ;;  %v168_v10 = vlaneseq }
  0x87   :  { %1018 = vmatprep.subr.bf16.mxu0 %v2587_v11 }
  0x88   :  { %v3146_v11 = vshrl.u32 %v168_v10, 7  ;;  %v2748_v10 = vld [vmem:[#allocation8 + $0x14] ss:$8 sps:$4 sm:$0xff]  }
  0x89   :  { %539 = vmatpush1.bf16.msra.mxu1 %v2502_v42  ;;  %v2604_v42 = vld [vmem:[#allocation7 + $0x4] ss:$16 sps:$4 sm:$0xff]  }
  0x8a   :  { %549 = vmatprep.subr.bf16.mxu1 %v2505_v44  ;;  %v2610_v44 = vld [vmem:[#allocation7 + $0x24] ss:$16 sps:$4 sm:$0xff]  }
  0x8c   :  { %541 = vmatmul.mubr.bf16.vlgmr.msra.gmra.mrb[0].mxu1 %v3132_v48 }
  0x8d   :  { %550 = vmatpush1.bf16.msra.mxu1 %v2503_v46  ;;  %581 = vmatprep.mubr.bf16.mxu1 %v3126_v14  ;;  %v2589_v14 = vld [vmem:[#allocation5 + $0xc0] ss:$8 sps:$4 sm:$0xff]   ;;  %v2616_v46 = vld [vmem:[#allocation7 + $0x44] ss:$16 sps:$4 sm:$0xff]  }
  0x8e   :  { %551 = vmatprep.subr.bf16.mxu1 %v2508_v49  ;;  %1019 = vmatpush1.bf16.msra.mxu0 %v2589_v14  ;;  %v2626_v49 = vld [vmem:[#allocation7 + $0x80] ss:$16 sps:$4 sm:$0xff]   ;;  %v3157_v14 = vsub.s32 1, %v3146_v11 }
  0x8f   :  { %1020 = vmatprep.subr.bf16.mxu0 %v2590_v15 }
  0x91   :  { %552 = vmatpush1.bf16.msra.mxu1 %v2506_v52  ;;  %v2634_v52 = vld [vmem:[#allocation7 + $0xa4] ss:$16 sps:$4 sm:$0xff]  }
  0x92   :  { %553 = vmatprep.subr.bf16.mxu1 %v2511_v53  ;;  %1021 = vmatpush1.bf16.msra.mxu0 %v2592_v18  ;;  %v2638_v53 = vld [vmem:[#allocation7 + $0xc0] ss:$16 sps:$4 sm:$0xff]  }
  0x93   :  { %1022 = vmatprep.subr.bf16.mxu0 %v2593_v36  ;;  %v2631_v36 = vld [vmem:[#allocation5 + $0x154] ss:$8 sps:$4 sm:$0xff]  }
  0x95   :  { %554 = vmatpush1.bf16.msra.mxu1 %v2509_v56  ;;  %v2646_v56 = vld [vmem:[#allocation7 + $0xe4] ss:$16 sps:$4 sm:$0xff]  }
  0x96   :  { %555 = vmatprep.subr.bf16.mxu1 %v2514_v57  ;;  %1023 = vmatpush1.bf16.msra.mxu0 %v2595_v37  ;;  %v2650_v57 = vld [vmem:[#allocation7 + $0x100] ss:$16 sps:$4 sm:$0xff]  }
  0x97   :  { %1024 = vmatprep.subr.bf16.mxu0 %v2596_v38  ;;  %v2629_v37 = vld [vmem:[#allocation5 + $0x150] ss:$8 sps:$4 sm:$0xff]   ;;  %v2637_v38 = vld [vmem:[#allocation5 + $0x164] ss:$8 sps:$4 sm:$0xff]  }
  0x99   :  { %556 = vmatpush1.bf16.msra.mxu1 %v2512_v60  ;;  %v2658_v60 = vld [vmem:[#allocation7 + $0x124] ss:$16 sps:$4 sm:$0xff]  }
  0x9a   :  { %557 = vmatprep.subr.bf16.mxu1 %v2517_v61  ;;  %1025 = vmatpush1.bf16.msra.mxu0 %v2598_v39  ;;  %v2662_v61 = vld [vmem:[#allocation7 + $0x140] ss:$16 sps:$4 sm:$0xff]  }
  0x9b   :  { %1035 = vmatprep.subr.bf16.mxu0 %v2601_v40  ;;  %v2635_v39 = vld [vmem:[#allocation5 + $0x160] ss:$8 sps:$4 sm:$0xff]   ;;  %v2643_v40 = vld [vmem:[#allocation5 + $0x174] ss:$8 sps:$4 sm:$0xff]  }
  0x9d   :  { %558 = vmatpush1.bf16.msra.mxu1 %v2515_v0  ;;  %v2670_v0 = vld [vmem:[#allocation7 + $0x164] ss:$16 sps:$4 sm:$0xff]  }
  0x9e   :  { %559 = vmatprep.subr.bf16.mxu1 %v2520_v1  ;;  %v2674_v1 = vld [vmem:[#allocation7 + $0x180] ss:$16 sps:$4 sm:$0xff]  }
  0xa1   :  { %560 = vmatpush1.bf16.msra.mxu1 %v2518_v4  ;;  %v2680_v4 = vld [vmem:[#allocation7 + $0x1a0] ss:$16 sps:$4 sm:$0xff]  }
  0xa2   :  { %561 = vmatprep.subr.bf16.mxu1 %v2523_v5  ;;  %v2688_v5 = vld [vmem:[#allocation7 + $0x1c4] ss:$16 sps:$4 sm:$0xff]  }
  0xa5   :  { %562 = vmatpush1.bf16.msra.mxu1 %v2521_v8  ;;  %v2692_v8 = vld [vmem:[#allocation7 + $0x1e0] ss:$16 sps:$4 sm:$0xff]  }
  0xa6   :  { %563 = vmatprep.subr.bf16.mxu1 %v2526_v9  ;;  %v2697_v9 = vld [vmem:[#allocation7 + $0xc] ss:$16 sps:$4 sm:$0xff]  }
  0xa9   :  { %564 = vmatpush1.bf16.msra.mxu1 %v2524_v12  ;;  %v3149_v12 = vsub.s32 0, %v3146_v11 }
  0xaa   :  { %565 = vmatprep.subr.bf16.mxu1 %v2529_v13  ;;  %v3154_v13 = vld [vmem:[%s3234_s4] sm:$0xf] }
  0xab   :  { %v171_v15 = vrot.slane %v3154_v13, %v3149_v12 }
  0xad   :  { %566 = vmatpush1.bf16.msra.mxu1 %v2527_v16  ;;  %v175_v16 = vrot.slane %v3154_v13, %v3157_v14 }
  0xae   :  { %567 = vmatprep.subr.bf16.mxu1 %v2532_v17 }
  0xb1   :  { %568 = vmatpush1.bf16.msra.mxu1 %v2530_v19 }
  0xb2   :  { %569 = vmatprep.subr.bf16.mxu1 %v2535_v20 }
  0xb5   :  { %570 = vmatpush1.bf16.msra.mxu1 %v2533_v21 }
  0xb6   :  { %571 = vmatprep.subr.bf16.mxu1 %v2538_v22 }
  0xb9   :  { %572 = vmatpush1.bf16.msra.mxu1 %v2536_v23 }
  0xba   :  { %573 = vmatprep.subr.bf16.mxu1 %v2541_v24 }
  0xbd   :  { %574 = vmatpush1.bf16.msra.mxu1 %v2539_v25 }
  0xbe   :  { %575 = vmatprep.subr.bf16.mxu1 %v2544_v26 }
  0xc1   :  { %576 = vmatpush1.bf16.msra.mxu1 %v2542_v27  ;;  %v2599_v27 = vld [vmem:[#allocation5 + $0x100] ss:$8 sps:$4 sm:$0xff]  }
  0xc2   :  { %577 = vmatprep.subr.bf16.mxu1 %v2547_v28  ;;  %v2607_v28 = vld [vmem:[#allocation5 + $0x114] ss:$8 sps:$4 sm:$0xff]  }
  0xc5   :  { %578 = vmatpush1.bf16.msra.mxu1 %v2545_v29  ;;  %v2605_v29 = vld [vmem:[#allocation5 + $0x110] ss:$8 sps:$4 sm:$0xff]  }
  0xc6   :  { %579 = vmatprep.subr.bf16.mxu1 %v2550_v30  ;;  %v2613_v30 = vld [vmem:[#allocation5 + $0x124] ss:$8 sps:$4 sm:$0xff]  }
  0xc9   :  { %580 = vmatpush1.bf16.msra.mxu1 %v2548_v31  ;;  %v2611_v31 = vld [vmem:[#allocation5 + $0x120] ss:$8 sps:$4 sm:$0xff]  }
  0xca   :  { %1087 = vmatprep.subr.mxu1 %v1082_v32  ;;  %v2619_v32 = vld [vmem:[#allocation5 + $0x134] ss:$8 sps:$4 sm:$0xff]  }
  0xcc   :  { %582 = vmatmul.mubr.bf16.vlgmr.msra.gmra.mrb[4].mxu1 %v3132_v48  ;;  %v2622_v48 = vld [vmem:[#allocation7 + $0x64] ss:$16 sps:$4 sm:$0xff]  }
  0xcd   :  { %1088 = vmatpush1.msra.mxu1 %v1081_v33  ;;  %1151 = vmatprep.mubr.f32.mxu1 %v2989_v34  ;;  %v2617_v33 = vld [vmem:[#allocation5 + $0x130] ss:$8 sps:$4 sm:$0xff]   ;;  %v2625_v34 = vld [vmem:[#allocation5 + $0x144] ss:$8 sps:$4 sm:$0xff]  }
  0xce   :  { %1568 = vmatprep.subr.bf16.mxu1 %v2604_v42  ;;  %v2649_v42 = vld [vmem:[#allocation5 + $0x184] ss:$8 sps:$4 sm:$0xff]  }
  0xd4   :  { %2303 = vmatmul.mubr.msk.f32.vlgmr.msra.gmra.mrb[8].mxu1 %vm1083_vm0, %v1080_v35  ;;  %v2623_v35 = vld [vmem:[#allocation5 + $0x140] ss:$8 sps:$4 sm:$0xff]  }
  0xd5   :  { %1569 = vmatpush1.bf16.msra.mxu1 %v2602_v41  ;;  %v2641_v41 = vld [vmem:[#allocation5 + $0x170] ss:$8 sps:$4 sm:$0xff]  }
  0xd6   :  { %1570 = vmatprep.subr.bf16.mxu1 %v2610_v44  ;;  %v2655_v44 = vld [vmem:[#allocation5 + $0x194] ss:$8 sps:$4 sm:$0xff]  }
  0xd9   :  { %1571 = vmatpush1.bf16.msra.mxu1 %v2608_v43  ;;  %v2647_v43 = vld [vmem:[#allocation5 + $0x180] ss:$8 sps:$4 sm:$0xff]  }
  0xda   :  { %1572 = vmatprep.subr.bf16.mxu1 %v2616_v46  ;;  %v2661_v46 = vld [vmem:[#allocation5 + $0x1a4] ss:$8 sps:$4 sm:$0xff]  }
  0xdd   :  { %1573 = vmatpush1.bf16.msra.mxu1 %v2614_v45  ;;  %v2653_v45 = vld [vmem:[#allocation5 + $0x190] ss:$8 sps:$4 sm:$0xff]  }
  0xde   :  { %1574 = vmatprep.subr.bf16.mxu1 %v2622_v48  ;;  %v2667_v48 = vld [vmem:[#allocation5 + $0x1b4] ss:$8 sps:$4 sm:$0xff]  }
  0xe1   :  { %1575 = vmatpush1.bf16.msra.mxu1 %v2620_v47  ;;  %v2659_v47 = vld [vmem:[#allocation5 + $0x1a0] ss:$8 sps:$4 sm:$0xff]  }
  0xe2   :  { %1576 = vmatprep.subr.bf16.mxu1 %v2628_v50  ;;  %v2673_v50 = vld [vmem:[#allocation5 + $0x1c4] ss:$8 sps:$4 sm:$0xff]  }
  0xe5   :  { %1577 = vmatpush1.bf16.msra.mxu1 %v2626_v49  ;;  %v2665_v49 = vld [vmem:[#allocation5 + $0x1b0] ss:$8 sps:$4 sm:$0xff]  }
  0xe6   :  { %1578 = vmatprep.subr.bf16.mxu1 %v2634_v52  ;;  %v2679_v52 = vld [vmem:[#allocation5 + $0x1d4] ss:$8 sps:$4 sm:$0xff]  }
  0xe9   :  { %1579 = vmatpush1.bf16.msra.mxu1 %v2632_v51  ;;  %v2671_v51 = vld [vmem:[#allocation5 + $0x1c0] ss:$8 sps:$4 sm:$0xff]  }
  0xea   :  { %1580 = vmatprep.subr.bf16.mxu1 %v2640_v54  ;;  %v2677_v54 = vld [vmem:[#allocation5 + $0x1d0] ss:$8 sps:$4 sm:$0xff]  }
  0xed   :  { %1581 = vmatpush1.bf16.msra.mxu1 %v2638_v53  ;;  %v178_v53 = vsub.s32 2, %v3146_v11 }
  0xee   :  { %1582 = vmatprep.subr.bf16.mxu1 %v2646_v56  ;;  %v2685_v56 = vld [vmem:[#allocation5 + $0x1e4] ss:$8 sps:$4 sm:$0xff]  }
  0xf1   :  { %1583 = vmatpush1.bf16.msra.mxu1 %v2644_v55  ;;  %v182_v55 = vsub.s32 3, %v3146_v11 }
  0xf2   :  { %1584 = vmatprep.subr.bf16.mxu1 %v2652_v58 }
  0xf3   :  { %v183_v58 = vrot.slane %v3154_v13, %v182_v55 }
  0xf5   :  { %1585 = vmatpush1.bf16.msra.mxu1 %v2650_v57  ;;  %v179_v57 = vrot.slane %v3154_v13, %v178_v53 }
  0xf6   :  { %1586 = vmatprep.subr.bf16.mxu1 %v2658_v60  ;;  %v2691_v60 = vld [vmem:[#allocation5 + $0x1f4] ss:$8 sps:$4 sm:$0xff]  }
  0xf9   :  { %1587 = vmatpush1.bf16.msra.mxu1 %v2656_v59  ;;  %v2683_v59 = vld [vmem:[#allocation5 + $0x1e0] ss:$8 sps:$4 sm:$0xff]  }
  0xfa   :  { %1588 = vmatprep.subr.bf16.mxu1 %v2664_v62 }
  0xfd   :  { %1589 = vmatpush1.bf16.msra.mxu1 %v2662_v61 }
  0xfe   :  { %1590 = vmatprep.subr.bf16.mxu1 %v2670_v0 }
 0x101   :  { %1591 = vmatpush1.bf16.msra.mxu1 %v2668_v63 }
 0x102   :  { %1592 = vmatprep.subr.bf16.mxu1 %v2676_v2  ;;  %v2689_v2 = vld [vmem:[#allocation5 + $0x1f0] ss:$8 sps:$4 sm:$0xff]  }
 0x105   :  { %1593 = vmatpush1.bf16.msra.mxu1 %v2674_v1 }
 0x106   :  { %1594 = vmatprep.subr.bf16.mxu1 %v2682_v3 }
 0x109   :  { %1595 = vmatpush1.bf16.msra.mxu1 %v2680_v4 }
 0x10a   :  { %1596 = vmatprep.subr.bf16.mxu1 %v2688_v5  ;;  %v2745_v5 = vld [vmem:[#allocation8 + $0x4] ss:$8 sps:$4 sm:$0xff]  }
 0x10d   :  { %1597 = vmatpush1.bf16.msra.mxu1 %v2686_v6 }
 0x10e   :  { %1598 = vmatprep.subr.bf16.mxu1 %v2694_v7 }
 0x111   :  { %1599 = vmatpush1.bf16.msra.mxu1 %v2692_v8  ;;  %v2743_v8 = vld [vmem:[#allocation8] ss:$8 sps:$4 sm:$0xff]  }
 0x112   :  { %1609 = vmatprep.subr.bf16.mxu1 %v2697_v9 }
 0x15f   :  { %v542_v17 = vpop.f32.mrb[0].mxu1 }
 0x160   :  { %v543_v18 = vadd.f32 %v542_v17, %v171_v15  ;;  %v544_v19 = vpop.f32.mrb[1].mxu1  ;;  %v2695_v17 = vld [vmem:[#allocation7 + $0x8] ss:$16 sps:$4 sm:$0xff]  }
 0x161   :  { %v545_v20 = vadd.f32 %v544_v19, %v175_v16  ;;  %v546_v21 = vpop.f32.mrb[2].mxu1  ;;  %v2700_v19 = vld [vmem:[#allocation7 + $0x2c] ss:$16 sps:$4 sm:$0xff]  }
 0x162   :  { %v590_v22 = vmax.f32 %v543_v18, 0.0  ;;  %v547_v23 = vpop.f32.mrb[3].mxu1  ;;  %v2751_v21 = vld [vmem:[#allocation8 + $0x24] ss:$8 sps:$4 sm:$0xff]  }
 0x163   :  { %v591_v24 = vmax.f32 %v545_v20, 0.0  ;;  %v2746_v20 = vld [vmem:[#allocation8 + $0x10] ss:$8 sps:$4 sm:$0xff]   ;;  %v2703_v23 = vld [vmem:[#allocation7 + $0x4c] ss:$16 sps:$4 sm:$0xff]  }
 0x164   :  { %v594_v25 = vpack.c.bf16 %v590_v22, %v590_v22  ;;  %v2698_v22 = vld [vmem:[#allocation7 + $0x28] ss:$16 sps:$4 sm:$0xff]  }
 0x165   :  { %v595_v26 = vpack.c.bf16 %v591_v24, %v591_v24  ;;  %v2749_v24 = vld [vmem:[#allocation8 + $0x20] ss:$8 sps:$4 sm:$0xff]  }
 0x167   :  { %1026 = vmatprep.mubr.bf16.mxu0 %v595_v26  ;;  %v2701_v26 = vld [vmem:[#allocation7 + $0x48] ss:$16 sps:$4 sm:$0xff]  }
 0x168   :  { %1027 = vmatmul.mubr.bf16.vlgmr.msra.gmra.mrb[0].mxu0 %v594_v25  ;;  %v2754_v25 = vld [vmem:[#allocation8 + $0x34] ss:$8 sps:$4 sm:$0xff]  }
 0x169   :  { %1036 = vmatpush1.bf16.msra.mxu0 %v2599_v27  ;;  %v2706_v27 = vld [vmem:[#allocation7 + $0x6c] ss:$16 sps:$4 sm:$0xff]  }
 0x16a   :  { %1037 = vmatprep.subr.bf16.mxu0 %v2607_v28  ;;  %v2752_v28 = vld [vmem:[#allocation8 + $0x30] ss:$8 sps:$4 sm:$0xff]  }
 0x16d   :  { %1038 = vmatpush1.bf16.msra.mxu0 %v2605_v29  ;;  %v2757_v29 = vld [vmem:[#allocation8 + $0x44] ss:$8 sps:$4 sm:$0xff]  }
 0x16e   :  { %1039 = vmatprep.subr.bf16.mxu0 %v2613_v30  ;;  %v2704_v30 = vld [vmem:[#allocation7 + $0x68] ss:$16 sps:$4 sm:$0xff]  }
 0x171   :  { %1040 = vmatpush1.bf16.msra.mxu0 %v2611_v31  ;;  %v2709_v31 = vld [vmem:[#allocation7 + $0x8c] ss:$16 sps:$4 sm:$0xff]  }
 0x172   :  { %1041 = vmatprep.subr.bf16.mxu0 %v2619_v32  ;;  %v2755_v32 = vld [vmem:[#allocation8 + $0x40] ss:$8 sps:$4 sm:$0xff]  }
 0x175   :  { %1042 = vmatpush1.bf16.msra.mxu0 %v2617_v33  ;;  %v2760_v33 = vld [vmem:[#allocation8 + $0x54] ss:$8 sps:$4 sm:$0xff]  }
 0x176   :  { %1043 = vmatprep.subr.bf16.mxu0 %v2625_v34  ;;  %v2707_v34 = vld [vmem:[#allocation7 + $0x88] ss:$16 sps:$4 sm:$0xff]  }
 0x179   :  { %1044 = vmatpush1.bf16.msra.mxu0 %v2623_v35  ;;  %v2712_v35 = vld [vmem:[#allocation7 + $0xac] ss:$16 sps:$4 sm:$0xff]  }
 0x17a   :  { %1045 = vmatprep.subr.bf16.mxu0 %v2631_v36  ;;  %v2758_v36 = vld [vmem:[#allocation8 + $0x50] ss:$8 sps:$4 sm:$0xff]  }
 0x17d   :  { %1046 = vmatpush1.bf16.msra.mxu0 %v2629_v37  ;;  %v2763_v37 = vld [vmem:[#allocation8 + $0x64] ss:$8 sps:$4 sm:$0xff]  }
 0x17e   :  { %1047 = vmatprep.subr.bf16.mxu0 %v2637_v38  ;;  %v2710_v38 = vld [vmem:[#allocation7 + $0xa8] ss:$16 sps:$4 sm:$0xff]  }
 0x181   :  { %1048 = vmatpush1.bf16.msra.mxu0 %v2635_v39  ;;  %v2715_v39 = vld [vmem:[#allocation7 + $0xcc] ss:$16 sps:$4 sm:$0xff]  }
 0x182   :  { %1049 = vmatprep.subr.bf16.mxu0 %v2643_v40  ;;  %v2761_v40 = vld [vmem:[#allocation8 + $0x60] ss:$8 sps:$4 sm:$0xff]  }
 0x185   :  { %1050 = vmatpush1.bf16.msra.mxu0 %v2641_v41  ;;  %v2766_v41 = vld [vmem:[#allocation8 + $0x74] ss:$8 sps:$4 sm:$0xff]  }
 0x186   :  { %1051 = vmatprep.subr.bf16.mxu0 %v2649_v42  ;;  %v2713_v42 = vld [vmem:[#allocation7 + $0xc8] ss:$16 sps:$4 sm:$0xff]  }
 0x189   :  { %1052 = vmatpush1.bf16.msra.mxu0 %v2647_v43  ;;  %v2718_v43 = vld [vmem:[#allocation7 + $0xec] ss:$16 sps:$4 sm:$0xff]  }
 0x18a   :  { %1053 = vmatprep.subr.bf16.mxu0 %v2655_v44  ;;  %v2764_v44 = vld [vmem:[#allocation8 + $0x70] ss:$8 sps:$4 sm:$0xff]  }
 0x18d   :  { %1054 = vmatpush1.bf16.msra.mxu0 %v2653_v45  ;;  %v2769_v45 = vld [vmem:[#allocation8 + $0x84] ss:$8 sps:$4 sm:$0xff]  }
 0x18e   :  { %1055 = vmatprep.subr.bf16.mxu0 %v2661_v46  ;;  %v2716_v46 = vld [vmem:[#allocation7 + $0xe8] ss:$16 sps:$4 sm:$0xff]  }
 0x191   :  { %1056 = vmatpush1.bf16.msra.mxu0 %v2659_v47  ;;  %v2721_v47 = vld [vmem:[#allocation7 + $0x10c] ss:$16 sps:$4 sm:$0xff]  }
 0x192   :  { %1057 = vmatprep.subr.bf16.mxu0 %v2667_v48  ;;  %v2767_v48 = vld [vmem:[#allocation8 + $0x80] ss:$8 sps:$4 sm:$0xff]  }
 0x195   :  { %1058 = vmatpush1.bf16.msra.mxu0 %v2665_v49  ;;  %v2772_v49 = vld [vmem:[#allocation8 + $0x94] ss:$8 sps:$4 sm:$0xff]  }
 0x196   :  { %1059 = vmatprep.subr.bf16.mxu0 %v2673_v50  ;;  %v2719_v50 = vld [vmem:[#allocation7 + $0x108] ss:$16 sps:$4 sm:$0xff]  }
 0x199   :  { %1060 = vmatpush1.bf16.msra.mxu0 %v2671_v51  ;;  %v2724_v51 = vld [vmem:[#allocation7 + $0x12c] ss:$16 sps:$4 sm:$0xff]  }
 0x19a   :  { %1061 = vmatprep.subr.bf16.mxu0 %v2679_v52  ;;  %v2770_v52 = vld [vmem:[#allocation8 + $0x90] ss:$8 sps:$4 sm:$0xff]  }
 0x19d   :  { %1062 = vmatpush1.bf16.msra.mxu0 %v2677_v54  ;;  %v2775_v54 = vld [vmem:[#allocation8 + $0xa4] ss:$8 sps:$4 sm:$0xff]  }
 0x19e   :  { %1063 = vmatprep.subr.bf16.mxu0 %v2685_v56  ;;  %v2722_v56 = vld [vmem:[#allocation7 + $0x128] ss:$16 sps:$4 sm:$0xff]  }
 0x19f   :  { %v583_v61 = vpop.f32.mrb[4].mxu1 }
 0x1a0   :  { %v584_v62 = vadd.f32 %v583_v61, %v179_v57  ;;  %v585_v63 = vpop.f32.mrb[5].mxu1  ;;  %v2727_v57 = vld [vmem:[#allocation7 + $0x14c] ss:$16 sps:$4 sm:$0xff]  }
 0x1a1   :  { %v586_v0 = vadd.f32 %v585_v63, %v183_v58  ;;  %v587_v1 = vpop.f32.mrb[6].mxu1  ;;  %1064 = vmatpush1.bf16.msra.mxu0 %v2683_v59  ;;  %v2773_v58 = vld [vmem:[#allocation8 + $0xa0] ss:$8 sps:$4 sm:$0xff]   ;;  %v2778_v59 = vld [vmem:[#allocation8 + $0xb4] ss:$8 sps:$4 sm:$0xff]  }
 0x1a2   :  { %v592_v3 = vmax.f32 %v584_v62, 0.0  ;;  %v588_v4 = vpop.f32.mrb[7].mxu1  ;;  %1065 = vmatprep.subr.bf16.mxu0 %v2691_v60  ;;  %v2725_v60 = vld [vmem:[#allocation7 + $0x148] ss:$16 sps:$4 sm:$0xff]   ;;  %v2730_v61 = vld [vmem:[#allocation7 + $0x16c] ss:$16 sps:$4 sm:$0xff]  }
 0x1a3   :  { %v593_v6 = vmax.f32 %v586_v0, 0.0  ;;  %v2776_v62 = vld [vmem:[#allocation8 + $0xb0] ss:$8 sps:$4 sm:$0xff]   ;;  %v2781_v63 = vld [vmem:[#allocation8 + $0xc4] ss:$8 sps:$4 sm:$0xff]  }
 0x1a4   :  { %v596_v9 = vpack.c.bf16 %v592_v3, %v592_v3  ;;  %v2728_v0 = vld [vmem:[#allocation7 + $0x168] ss:$16 sps:$4 sm:$0xff]   ;;  %v2733_v1 = vld [vmem:[#allocation7 + $0x18c] ss:$16 sps:$4 sm:$0xff]  }
 0x1a5   :  { %v597_v7 = vpack.c.bf16 %v593_v6, %v593_v6  ;;  %1066 = vmatpush1.bf16.msra.mxu0 %v2689_v2  ;;  %v2779_v2 = vld [vmem:[#allocation8 + $0xc0] ss:$8 sps:$4 sm:$0xff]   ;;  %v2736_v4 = vld [vmem:[#allocation7 + $0x1ac] ss:$16 sps:$4 sm:$0xff]  }
 0x1a6   :  { %2054 = vmatprep.subr.bf16.mxu0 %v2745_v5  ;;  %v2731_v3 = vld [vmem:[#allocation7 + $0x188] ss:$16 sps:$4 sm:$0xff]   ;;  %v2739_v6 = vld [vmem:[#allocation7 + $0x1cc] ss:$16 sps:$4 sm:$0xff]  }
 0x1a7   :  { %1067 = vmatprep.mubr.bf16.mxu0 %v597_v7  ;;  %v1153_v13 = vpop.f32.mrb[8].mxu1  ;;  %v2734_v5 = vld [vmem:[#allocation7 + $0x1a8] ss:$16 sps:$4 sm:$0xff]  }
 0x1a8   :  { %1158 = vst [vmem:[#allocation11] sm:$0xff] %v1153_v13  ;;  %1068 = vmatmul.mubr.bf16.vlgmr.msra.gmra.mrb[0].mxu0 %v596_v9  ;;  %v1155_v15 = vpop.f32.mrb[9].mxu1  ;;  %v3171_v18 = vpack.c.bf16 %v1153_v13, %v1153_v13  ;;  %v2737_v7 = vld [vmem:[#allocation7 + $0x1c8] ss:$16 sps:$4 sm:$0xff]  }
 0x1a9   :  { %1159 = vst [vmem:[#allocation11 + $0x8] sm:$0xff] %v1155_v15  ;;  %v1161_v16 = vpack.c.bf16 %v1155_v15, %v1155_v15  ;;  %2055 = vmatpush1.bf16.msra.mxu0 %v2743_v8  ;;  %v2742_v8 = vld [vmem:[#allocation7 + $0x1ec] ss:$16 sps:$4 sm:$0xff]   ;;  %v2740_v9 = vld [vmem:[#allocation7 + $0x1e8] ss:$16 sps:$4 sm:$0xff]  }
 0x1aa   :  { %2056 = vmatprep.subr.bf16.mxu0 %v2748_v10  ;;  %v2784_v10 = vld [vmem:[#allocation8 + $0xd4] ss:$8 sps:$4 sm:$0xff]   ;;  %v2782_v13 = vld [vmem:[#allocation8 + $0xd0] ss:$8 sps:$4 sm:$0xff]   ;;  %v2787_v15 = vld [vmem:[#allocation8 + $0xe4] ss:$8 sps:$4 sm:$0xff]  }
 0x1ab   :  { %1600 = vmatprep.mubr.bf16.mxu1 %v1161_v16 }
 0x1ac   :  { %1601 = vmatmul.mubr.bf16.vlgmr.msra.gmra.mrb[12].mxu1 %v3171_v18 }
 0x1ad   :  { %1610 = vmatpush1.bf16.msra.mxu1 %v2695_v17  ;;  %1641 = vmatprep.mubr.bf16.mxu1 %v1161_v16  ;;  %v2785_v16 = vld [vmem:[#allocation8 + $0xe0] ss:$8 sps:$4 sm:$0xff]   ;;  %v2790_v17 = vld [vmem:[#allocation8 + $0xf4] ss:$8 sps:$4 sm:$0xff]  }
 0x1ae   :  { %1611 = vmatprep.subr.bf16.mxu1 %v2700_v19  ;;  %2057 = vmatpush1.bf16.msra.mxu0 %v2746_v20  ;;  %v2788_v19 = vld [vmem:[#allocation8 + $0xf0] ss:$8 sps:$4 sm:$0xff]   ;;  %v2793_v20 = vld [vmem:[#allocation8 + $0x104] ss:$8 sps:$4 sm:$0xff]  }
 0x1af   :  { %2058 = vmatprep.subr.bf16.mxu0 %v2751_v21  ;;  %v662_v21 = vld [vmem:[%s3236_s6] sm:$0x3]  ;;  %s2990_s6 = smov [#allocation10]  }
 0x1b1   :  { %1612 = vmatpush1.bf16.msra.mxu1 %v2698_v22  ;;  %v671_v22 = vrot.slane %v662_v21, %v3157_v14 }
 0x1b2   :  { %1613 = vmatprep.subr.bf16.mxu1 %v2703_v23  ;;  %2059 = vmatpush1.bf16.msra.mxu0 %v2749_v24  ;;  %v3183_v23 = vld [vmem:[%s3238_s8] sm:$0xf]  ;;  %s2148_s8 = sshll.u32 %s2990_s6, 4  ;;  %s2149_s8 = int_to_ptr.vmem [resolvable:$true] %s2148_s8 }
 0x1b3   :  { %2060 = vmatprep.subr.bf16.mxu0 %v2754_v25  ;;  %s2927_s25 = scalar_lea.vmem %s2149_s8, 256  ;;  %p2932_p5 = scmp.lt.s32.totalorder %s2149_s8, %s2149_s8 }
 0x1b4   :  { %p2928_p4 = scmp.ne.s32.totalorder %s2149_s8, %s2927_s25  ;;  %p2933_p6 = scmp.lt.s32.totalorder %s2927_s25, %s2927_s25 }
 0x1b5   :  { %1614 = vmatpush1.bf16.msra.mxu1 %v2701_v26 }
 0x1b6   :  { %1615 = vmatprep.subr.bf16.mxu1 %v2706_v27  ;;  %2061 = vmatpush1.bf16.msra.mxu0 %v2752_v28  ;;  %v1231_v27 = vrot.slane %v3183_v23, %v3149_v12  ;;  %p2934_p7 = por %p2933_p6, %p2932_p5 }
 0x1b7   :  { %2062 = vmatprep.subr.bf16.mxu0 %v2757_v29 }
 0x1b8   :  { %p2935_p8 = pnand %p2934_p7, %p2928_p4 }
 0x1b9   :  { %1616 = vmatpush1.bf16.msra.mxu1 %v2704_v30  ;;  %v1235_v30 = vrot.slane %v3183_v23, %v3157_v14 }
 0x1ba   :  { %1617 = vmatprep.subr.bf16.mxu1 %v2709_v31  ;;  %2063 = vmatpush1.bf16.msra.mxu0 %v2755_v32 }
 0x1bb   :  { %2064 = vmatprep.subr.bf16.mxu0 %v2760_v33 }
 0x1bd   :  { %1618 = vmatpush1.bf16.msra.mxu1 %v2707_v34 }
 0x1be   :  { %1619 = vmatprep.subr.bf16.mxu1 %v2712_v35  ;;  %2065 = vmatpush1.bf16.msra.mxu0 %v2758_v36 }
 0x1bf   :  { %2066 = vmatprep.subr.bf16.mxu0 %v2763_v37 }
 0x1c1   :  { %1620 = vmatpush1.bf16.msra.mxu1 %v2710_v38 }
 0x1c2   :  { %1621 = vmatprep.subr.bf16.mxu1 %v2715_v39  ;;  %2067 = vmatpush1.bf16.msra.mxu0 %v2761_v40 }
 0x1c3   :  { %2068 = vmatprep.subr.bf16.mxu0 %v2766_v41 }
 0x1c5   :  { %1622 = vmatpush1.bf16.msra.mxu1 %v2713_v42 }
 0x1c6   :  { %1623 = vmatprep.subr.bf16.mxu1 %v2718_v43  ;;  %2069 = vmatpush1.bf16.msra.mxu0 %v2764_v44  ;;  %v2791_v43 = vld [vmem:[#allocation8 + $0x100] ss:$8 sps:$4 sm:$0xff]  }
 0x1c7   :  { %2070 = vmatprep.subr.bf16.mxu0 %v2769_v45  ;;  %v2796_v45 = vld [vmem:[#allocation8 + $0x114] ss:$8 sps:$4 sm:$0xff]  }
 0x1c9   :  { %1624 = vmatpush1.bf16.msra.mxu1 %v2716_v46  ;;  %v2794_v46 = vld [vmem:[#allocation8 + $0x110] ss:$8 sps:$4 sm:$0xff]  }
 0x1ca   :  { %1625 = vmatprep.subr.bf16.mxu1 %v2721_v47  ;;  %2071 = vmatpush1.bf16.msra.mxu0 %v2767_v48  ;;  %v2799_v47 = vld [vmem:[#allocation8 + $0x124] ss:$8 sps:$4 sm:$0xff]   ;;  %v2797_v48 = vld [vmem:[#allocation8 + $0x120] ss:$8 sps:$4 sm:$0xff]  }
 0x1cb   :  { %2072 = vmatprep.subr.bf16.mxu0 %v2772_v49  ;;  %v2802_v49 = vld [vmem:[#allocation8 + $0x134] ss:$8 sps:$4 sm:$0xff]  }
 0x1cd   :  { %1626 = vmatpush1.bf16.msra.mxu1 %v2719_v50  ;;  %v2800_v50 = vld [vmem:[#allocation8 + $0x130] ss:$8 sps:$4 sm:$0xff]  }
 0x1ce   :  { %1627 = vmatprep.subr.bf16.mxu1 %v2724_v51  ;;  %2073 = vmatpush1.bf16.msra.mxu0 %v2770_v52  ;;  %v2805_v51 = vld [vmem:[#allocation8 + $0x144] ss:$8 sps:$4 sm:$0xff]   ;;  %v2803_v52 = vld [vmem:[#allocation8 + $0x140] ss:$8 sps:$4 sm:$0xff]  }
 0x1cf   :  { %2074 = vmatprep.subr.bf16.mxu0 %v2775_v54  ;;  %v2808_v54 = vld [vmem:[#allocation8 + $0x154] ss:$8 sps:$4 sm:$0xff]  }
 0x1d1   :  { %1628 = vmatpush1.bf16.msra.mxu1 %v2722_v56  ;;  %v2806_v56 = vld [vmem:[#allocation8 + $0x150] ss:$8 sps:$4 sm:$0xff]  }
 0x1d2   :  { %1629 = vmatprep.subr.bf16.mxu1 %v2727_v57  ;;  %2075 = vmatpush1.bf16.msra.mxu0 %v2773_v58  ;;  %v2811_v57 = vld [vmem:[#allocation8 + $0x164] ss:$8 sps:$4 sm:$0xff]   ;;  %v2809_v58 = vld [vmem:[#allocation8 + $0x160] ss:$8 sps:$4 sm:$0xff]  }
 0x1d3   :  { %2076 = vmatprep.subr.bf16.mxu0 %v2778_v59  ;;  %v2814_v59 = vld [vmem:[#allocation8 + $0x174] ss:$8 sps:$4 sm:$0xff]  }
 0x1d5   :  { %1630 = vmatpush1.bf16.msra.mxu1 %v2725_v60  ;;  %v2812_v60 = vld [vmem:[#allocation8 + $0x170] ss:$8 sps:$4 sm:$0xff]  }
 0x1d6   :  { %1631 = vmatprep.subr.bf16.mxu1 %v2730_v61  ;;  %2077 = vmatpush1.bf16.msra.mxu0 %v2776_v62  ;;  %v2817_v61 = vld [vmem:[#allocation8 + $0x184] ss:$8 sps:$4 sm:$0xff]   ;;  %v2815_v62 = vld [vmem:[#allocation8 + $0x180] ss:$8 sps:$4 sm:$0xff]  }
 0x1d7   :  { %2078 = vmatprep.subr.bf16.mxu0 %v2781_v63  ;;  %v2820_v63 = vld [vmem:[#allocation8 + $0x194] ss:$8 sps:$4 sm:$0xff]  }
 0x1d9   :  { %1632 = vmatpush1.bf16.msra.mxu1 %v2728_v0  ;;  %v2818_v0 = vld [vmem:[#allocation8 + $0x190] ss:$8 sps:$4 sm:$0xff]  }
 0x1da   :  { %1633 = vmatprep.subr.bf16.mxu1 %v2733_v1  ;;  %2079 = vmatpush1.bf16.msra.mxu0 %v2779_v2  ;;  %v2823_v1 = vld [vmem:[#allocation8 + $0x1a4] ss:$8 sps:$4 sm:$0xff]   ;;  %v2821_v2 = vld [vmem:[#allocation8 + $0x1a0] ss:$8 sps:$4 sm:$0xff]  }
 0x1db   :  { %2080 = vmatprep.subr.bf16.mxu0 %v2784_v10  ;;  %v1239_v10 = vrot.slane %v3183_v23, %v178_v53 }
 0x1dd   :  { %1634 = vmatpush1.bf16.msra.mxu1 %v2731_v3  ;;  %v2826_v3 = vld [vmem:[#allocation8 + $0x1b4] ss:$8 sps:$4 sm:$0xff]  }
 0x1de   :  { %1635 = vmatprep.subr.bf16.mxu1 %v2736_v4  ;;  %2081 = vmatpush1.bf16.msra.mxu0 %v2782_v13  ;;  %v2824_v4 = vld [vmem:[#allocation8 + $0x1b0] ss:$8 sps:$4 sm:$0xff]   ;;  %v1243_v13 = vrot.slane %v3183_v23, %v182_v55 }
 0x1df   :  { %2082 = vmatprep.subr.bf16.mxu0 %v2787_v15  ;;  %v2833_v15 = vld [vmem:[#allocation8 + $0x1e0] ss:$8 sps:$4 sm:$0xff]  }
 0x1e1   :  { %1636 = vmatpush1.bf16.msra.mxu1 %v2734_v5  ;;  %v2829_v5 = vld [vmem:[#allocation8 + $0x1c4] ss:$8 sps:$4 sm:$0xff]  }
 0x1e2   :  { %1637 = vmatprep.subr.bf16.mxu1 %v2739_v6  ;;  %2083 = vmatpush1.bf16.msra.mxu0 %v2785_v16  ;;  %v2827_v6 = vld [vmem:[#allocation8 + $0x1c0] ss:$8 sps:$4 sm:$0xff]   ;;  %v2838_v16 = vld [vmem:[#allocation8 + $0x1f4] ss:$8 sps:$4 sm:$0xff]  }
 0x1e3   :  { %2084 = vmatprep.subr.bf16.mxu0 %v2790_v17 }
 0x1e5   :  { %1638 = vmatpush1.bf16.msra.mxu1 %v2737_v7  ;;  %v2832_v7 = vld [vmem:[#allocation8 + $0x1d4] ss:$8 sps:$4 sm:$0xff]  }
 0x1e6   :  { %1639 = vmatprep.subr.bf16.mxu1 %v2742_v8  ;;  %2085 = vmatpush1.bf16.msra.mxu0 %v2788_v19  ;;  %v2830_v8 = vld [vmem:[#allocation8 + $0x1d0] ss:$8 sps:$4 sm:$0xff]  }
 0x1e7   :  { %2095 = vmatprep.subr.bf16.mxu0 %v2793_v20 }
 0x1e9   :  { %1640 = vmatpush1.bf16.msra.mxu1 %v2740_v9  ;;  %v2835_v9 = vld [vmem:[#allocation8 + $0x1e4] ss:$8 sps:$4 sm:$0xff]  }
 0x1ec   :  { %1642 = vmatmul.mubr.bf16.vlgmr.msra.gmra.mrb[16].mxu1 %v3171_v18  ;;  %v667_v18 = vrot.slane %v662_v21, %v3149_v12 }
 0x27b   :  { %v1069_v24 = vpop.f32.mrb[0].mxu0 }
 0x27c   :  { %v2432_v25 = vadd.f32 %v1069_v24, %v667_v18  ;;  %v1071_v26 = vpop.f32.mrb[1].mxu0 }
 0x27d   :  { %v2433_v28 = vadd.f32 %v1071_v26, %v671_v22  ;;  %v1073_v29 = vpop.f32.mrb[2].mxu0  ;;  %v2836_v22 = vld [vmem:[#allocation8 + $0x1f0] ss:$8 sps:$4 sm:$0xff]  }
 0x27e   :  { %v1076_v31 = vmax.f32 %v2432_v25, 0.0  ;;  %v1074_v32 = vpop.f32.mrb[3].mxu0 }
 0x27f   :  { %v1077_v33 = vmax.f32 %v2433_v28, 0.0  ;;  %v1602_v34 = vpop.f32.mrb[12].mxu1 }
 0x280   :  { %1078 = vst [vmem:[#allocation10] sm:$0xff] %v1076_v31  ;;  %v1603_v35 = vadd.f32 %v1602_v34, %v1231_v27  ;;  %v1604_v36 = vpop.f32.mrb[13].mxu1 }
 0x281   :  { %1079 = vst [vmem:[#allocation10 + $0x8] sm:$0xff] %v1077_v33  ;;  %v1605_v37 = vadd.f32 %v1604_v36, %v1235_v30  ;;  %v1606_v38 = vpop.f32.mrb[14].mxu1 }
 0x282   :  { %v1650_v39 = vmax.f32 %v1603_v35, 0.0  ;;  %v1607_v40 = vpop.f32.mrb[15].mxu1 }
 0x283   :  { %v1651_v41 = vmax.f32 %v1605_v37, 0.0 }
 0x284   :  { %v1654_v44 = vpack.c.bf16 %v1650_v39, %v1650_v39 }
 0x285   :  { %v1655_v42 = vpack.c.bf16 %v1651_v41, %v1651_v41 }
 0x287   :  { %2086 = vmatprep.mubr.bf16.mxu0 %v1655_v42 }
 0x288   :  { %2087 = vmatmul.mubr.bf16.vlgmr.msra.gmra.mrb[4].mxu0 %v1654_v44 }
 0x289   :  { %2096 = vmatpush1.bf16.msra.mxu0 %v2791_v43 }
 0x28a   :  { %2097 = vmatprep.subr.bf16.mxu0 %v2796_v45 }
 0x28d   :  { %2098 = vmatpush1.bf16.msra.mxu0 %v2794_v46 }
 0x28e   :  { %2099 = vmatprep.subr.bf16.mxu0 %v2799_v47 }
 0x291   :  { %2100 = vmatpush1.bf16.msra.mxu0 %v2797_v48 }
 0x292   :  { %2101 = vmatprep.subr.bf16.mxu0 %v2802_v49 }
 0x295   :  { %2102 = vmatpush1.bf16.msra.mxu0 %v2800_v50 }
 0x296   :  { %2103 = vmatprep.subr.bf16.mxu0 %v2805_v51 }
 0x299   :  { %2104 = vmatpush1.bf16.msra.mxu0 %v2803_v52 }
 0x29a   :  { %2105 = vmatprep.subr.bf16.mxu0 %v2808_v54 }
 0x29d   :  { %2106 = vmatpush1.bf16.msra.mxu0 %v2806_v56 }
 0x29e   :  { %2107 = vmatprep.subr.bf16.mxu0 %v2811_v57 }
 0x2a1   :  { %2108 = vmatpush1.bf16.msra.mxu0 %v2809_v58 }
 0x2a2   :  { %2109 = vmatprep.subr.bf16.mxu0 %v2814_v59 }
 0x2a5   :  { %2110 = vmatpush1.bf16.msra.mxu0 %v2812_v60 }
 0x2a6   :  { %2111 = vmatprep.subr.bf16.mxu0 %v2817_v61 }
 0x2a9   :  { %2112 = vmatpush1.bf16.msra.mxu0 %v2815_v62 }
 0x2aa   :  { %2113 = vmatprep.subr.bf16.mxu0 %v2820_v63 }
 0x2ad   :  { %2114 = vmatpush1.bf16.msra.mxu0 %v2818_v0 }
 0x2ae   :  { %2115 = vmatprep.subr.bf16.mxu0 %v2823_v1 }
 0x2b1   :  { %2116 = vmatpush1.bf16.msra.mxu0 %v2821_v2 }
 0x2b2   :  { %2117 = vmatprep.subr.bf16.mxu0 %v2826_v3 }
 0x2b5   :  { %2118 = vmatpush1.bf16.msra.mxu0 %v2824_v4 }
 0x2b6   :  { %2119 = vmatprep.subr.bf16.mxu0 %v2829_v5 }
 0x2b9   :  { %2120 = vmatpush1.bf16.msra.mxu0 %v2827_v6 }
 0x2ba   :  { %2121 = vmatprep.subr.bf16.mxu0 %v2832_v7 }
 0x2bd   :  { %2122 = vmatpush1.bf16.msra.mxu0 %v2830_v8 }
 0x2be   :  { %2123 = vmatprep.subr.bf16.mxu0 %v2835_v9 }
 0x2bf   :  { %v1643_v17 = vpop.f32.mrb[16].mxu1 }
 0x2c0   :  { %v1644_v19 = vadd.f32 %v1643_v17, %v1239_v10  ;;  %v1645_v20 = vpop.f32.mrb[17].mxu1 }
 0x2c1   :  { %v1646_v21 = vadd.f32 %v1645_v20, %v1243_v13  ;;  %v1647_v18 = vpop.f32.mrb[18].mxu1  ;;  %2124 = vmatpush1.bf16.msra.mxu0 %v2833_v15 }
 0x2c2   :  { %v1652_v24 = vmax.f32 %v1644_v19, 0.0  ;;  %v1648_v25 = vpop.f32.mrb[19].mxu1  ;;  %2125 = vmatprep.subr.bf16.mxu0 %v2838_v16 }
 0x2c3   :  { %v1653_v26 = vmax.f32 %v1646_v21, 0.0 }
 0x2c4   :  { %v1656_v27 = vpack.c.bf16 %v1652_v24, %v1652_v24 }
 0x2c5   :  { %v1657_v53 = vpack.c.bf16 %v1653_v26, %v1653_v26  ;;  %2126 = vmatpush1.bf16.msra.mxu0 %v2836_v22 }
 0x2c7   :  { %2127 = vmatprep.mubr.bf16.mxu0 %v1657_v53 }
 0x2c8   :  { %2128 = vmatmul.mubr.bf16.vlgmr.msra.gmra.mrb[4].mxu0 %v1656_v27 }
 0x2c9   :  { %2938 = shalt.err (!%p2935_p8)
}
 0x2ca   :  { %s2939_s29 = scalar_lea.hbm %s3242_s12, 256 }
 0x2cb   :  { %p2940_p9 = scmp.ne.s32.totalorder %s3242_s12, %s2939_s29  ;;  %p2943_p10 = scmp.lt.u32.totalorder %s2939_s29, %s3242_s12 }
 0x2cd   :  { %p2945_p11 = pnand %p2943_p10, %p2940_p9 }
 0x2cf   :  { %2948 = shalt.err (!%p2945_p11)
}
 0x2d0   :  { %2151 = dma.vmem_to_hbm [thread:$0]  %s2149_s8, 256, %s3242_s12, [#allocation4]  }
 0x2d1   :  { %s2949_s26 = scalar_lea.vmem %s2159_s22, 256  ;;  %p2954_p13 = scmp.lt.s32.totalorder %s2159_s22, %s2159_s22 }
 0x2d2   :  { %p2950_p12 = scmp.ne.s32.totalorder %s2159_s22, %s2949_s26  ;;  %p2955_p0 = scmp.lt.s32.totalorder %s2949_s26, %s2949_s26 }
 0x2d4   :  { %p2956_p1 = por %p2955_p0, %p2954_p13 }
 0x2d6   :  { %p2957_p2 = pnand %p2956_p1, %p2950_p12 }
 0x2d8   :  { %2960 = shalt.err (!%p2957_p2)
}
 0x2d9   :  { %s2961_s24 = scalar_lea.hbm %s3243_s13, 256 }
 0x2da   :  { %p2962_p3 = scmp.ne.s32.totalorder %s3243_s13, %s2961_s24  ;;  %p2965_p4 = scmp.lt.u32.totalorder %s2961_s24, %s3243_s13 }
 0x2dc   :  { %p2967_p5 = pnand %p2965_p4, %p2962_p3 }
 0x2de   :  { %2970 = shalt.err (!%p2967_p5)
}
 0x2df   :  { %2161 = dma.vmem_to_hbm [thread:$0]  %s2159_s22, 256, %s3243_s13, [#allocation12]   ;;  %v1722_v11 = vld [vmem:[%s3240_s10] sm:$0x3] }
 0x2e0   :  { %v1727_v55 = vrot.slane %v1722_v11, %v3149_v12  ;;  %v1731_v23 = vrot.slane %v1722_v11, %v3157_v14 }
 0x39b   :  { %v2129_v28 = vpop.f32.mrb[4].mxu0 }
 0x39c   :  { %v2434_v29 = vadd.f32 %v2129_v28, %v1727_v55  ;;  %v2131_v30 = vpop.f32.mrb[5].mxu0 }
 0x39d   :  { %v2435_v31 = vadd.f32 %v2131_v30, %v1731_v23  ;;  %v2133_v32 = vpop.f32.mrb[6].mxu0 }
 0x39e   :  { %v2136_v33 = vmax.f32 %v2434_v29, 0.0  ;;  %v2134_v34 = vpop.f32.mrb[7].mxu0 }
 0x39f   :  { %v2137_v35 = vmax.f32 %v2435_v31, 0.0 }
 0x3a0   :  { %2138 = vst [vmem:[%s3241_s11] sm:$0xff] %v2136_v33 }
 0x3a1   :  { %2139 = vst [vmem:[%s3241_s11 + $0x8] sm:$0xff] %v2137_v35 }
 0x3a2   :  { %2977 = dma.done.wait [#allocation4], 256  }
 0x3a3   :  { %2978 = vsyncadd [#allocation4], 4294967040 }
 0x3a4   :  { %2979 = dma.done.wait [#allocation12], 256  }
 0x3a5   :  { %2980 = vsyncadd [#allocation12], 4294967040 }
 0x3a6   :  { %2170 = vsyncpa [#allocation3], 1 }
 0x3a7   :  { %2171 = vsyncpa [#allocation6], 1 }
 0x3a8   :  { %2172 = vsyncpa [#allocation9], 1 }
 0x3a9   :  { %2173 = vsyncpa [#allocation4], 1 }
 0x3aa   :  { %2174 = vsyncpa [#allocation12], 1 }

</bundles_post_ra>
